<compile_context>
chip_gen: v7x
topology: tpu7x:2x2x1
jax: 0.10.0
libtpu: 0.0.40
codegen_flags: <defaults>
</compile_context>

<pallas_src>
import functools
import math

import jax
import jax.numpy as jnp
from jax import lax
from jax.experimental import pallas as pl
from jax.experimental.pallas import tpu as pltpu


def _run_loop(n, body, *, unroll_limit=4):
    """Statically unroll very short loops; otherwise emit an in-kernel loop."""
    if n <= unroll_limit:
        for i in range(n):
            body(i)
    else:
        @pl.loop(0, n)
        def _(i):
            body(i)


def _pick_q_strip(n):
    """Largest query-row strip (multiple of 8, <=64) that divides N."""
    if n <= 64:
        return n
    for qs in (64, 32, 16, 8):
        if n % qs == 0:
            return qs
    return n


def synth_attention_kernel(h_ref, aux_ref, wqkv_ref, woutf_ref,
                           w1_ref, b1_ref, w2_ref, b2_ref,
                           out_ref, qkv_sc, heads_sc, *, q_strip):
    Bt, N, D = h_ref.shape          # (block_b, N, D)
    H = aux_ref.shape[0]            # aux block: (H, block_b, N, N)
    Hhd = woutf_ref.shape[0]        # H * hd
    hd = Hhd // H
    C = 2 * H                       # channels into score_aggr
    qs = q_strip
    n_strips = N // qs

    def batch_body(bb):
        # ---- fused QKV projection: one wide MXU matmul, staged in VMEM -----
        qkv_sc[...] = jnp.dot(h_ref[bb], wqkv_ref[...],
                              preferred_element_type=jnp.float32)  # (N, 3*H*hd)

        def strip_body(si):
            r0 = si * qs
            if not isinstance(r0, int):
                r0 = pl.multiple_of(r0, qs)
            rows = pl.ds(r0, qs)

            # ---- 2H compat channels for this query strip ------------------
            # Channels 0..H-1: Q_h @ K_h^T (dot_general, no .T relayout);
            # channels H..2H-1: aux (matches torch.cat((QK, aux), 0)).
            compat = []
            for h in range(H):
                q_h = qkv_sc[rows, h * hd:(h + 1) * hd]              # (qs, hd)
                k_h = qkv_sc[:, Hhd + h * hd:Hhd + (h + 1) * hd]     # (N, hd)
                compat.append(lax.dot_general(
                    q_h, k_h, (((1,), (1,)), ((), ())),
                    preferred_element_type=jnp.float32))             # (qs, N)
            for h in range(H):
                compat.append(aux_ref[h, bb, rows, :])               # (qs, N)

            # ---- score_aggr MLP as a streamed VPU channel mix --------------
            # One hid channel live at a time, accumulated into H att slabs.
            att = [None] * H
            for co in range(C):
                acc = compat[0] * w1_ref[co, 0]
                for ci in range(1, C):
                    acc = acc + compat[ci] * w1_ref[co, ci]
                hid_co = jnp.maximum(acc + b1_ref[co], 0.0)          # (qs, N)
                for h in range(H):
                    contrib = hid_co * w2_ref[h, co]
                    att[h] = contrib if att[h] is None else att[h] + contrib

            # ---- per-head softmax + attention @ V --------------------------
            for h in range(H):
                a = att[h] + b2_ref[h]                               # (qs, N)
                m = jnp.max(a, axis=-1, keepdims=True)
                e = jnp.exp(a - m)
                s = jnp.sum(e, axis=-1, keepdims=True)               # (qs, 1)
                r = pl.reciprocal(s, approx=True)                    # EUP vrcp
                r = r * (2.0 - s * r)                                # Newton -> f32
                p = e * r                                            # (qs, N)
                v_h = qkv_sc[:, 2 * Hhd + h * hd:2 * Hhd + (h + 1) * hd]
                heads_sc[rows, h * hd:(h + 1) * hd] = jnp.dot(
                    p, v_h, preferred_element_type=jnp.float32)      # (qs, hd)

        _run_loop(n_strips, strip_body)

        # ---- fused output projection: one matmul over H*hd ------------------
        out_ref[bb] = jnp.dot(heads_sc[...], woutf_ref[...],
                              preferred_element_type=jnp.float32
                              ).astype(out_ref.dtype)

    _run_loop(Bt, batch_body)


def synth_attention(h_fea, aux_att_score, wq, wk, wv, w1t, b1, w2t, b2, wout,
                    *, block_b=1, q_strip=None):
    """Forward pass of Synth_Attention.

    h_fea:          (B, N, D)
    aux_att_score:  (H, B, N, N)   (native layout, returned unchanged)
    wq/wk/wv:       (H, D, hd)
    w1t, b1:        (2H, 2H), (2H,)   score_aggr Linear(2H->2H), (out,in) weight
    w2t, b2:        (H, 2H),  (H,)    score_aggr Linear(2H->H),  (out,in) weight
    wout:           (H, hd, D)
    """
    B, N, D = h_fea.shape
    H, _, hd = wq.shape
    assert B % block_b == 0, "block_b must divide the batch"
    grid_b = B // block_b

    if q_strip is None:
        q_strip = _pick_q_strip(N)
    assert N % q_strip == 0

    # ---- host-side (tiny, one-time) weight packing -------------------------
    # QKV weights fused along the output dim: (D, 3*H*hd), head-major columns.
    w_qkv = jnp.concatenate(
        [jnp.transpose(w, (1, 0, 2)).reshape(D, H * hd) for w in (wq, wk, wv)],
        axis=1)
    # Output projection flattened exactly like torch's W_out.view(-1, input_dim).
    w_out_flat = wout.reshape(H * hd, D)
    b1f = b1.reshape(-1)
    b2f = b2.reshape(-1)

    smem = lambda: pl.BlockSpec(memory_space=pltpu.MemorySpace.SMEM)
    kernel = functools.partial(synth_attention_kernel, q_strip=q_strip)

    h_wave = pl.pallas_call(
        kernel,
        out_shape=jax.ShapeDtypeStruct((B, N, D), h_fea.dtype),
        grid_spec=pltpu.PrefetchScalarGridSpec(
            num_scalar_prefetch=0,
            grid=(grid_b,),
            in_specs=[
                pl.BlockSpec((block_b, N, D), lambda b: (b, 0, 0)),      # h_fea
                pl.BlockSpec((H, block_b, N, N),
                             lambda b: (0, b, 0, 0)),                    # aux, native layout
                pl.BlockSpec((D, 3 * H * hd), lambda b: (0, 0)),         # packed W_qkv
                pl.BlockSpec((H * hd, D), lambda b: (0, 0)),             # flat W_out
                smem(),                                                  # score_aggr L1 weight
                smem(),                                                  # score_aggr L1 bias
                smem(),                                                  # score_aggr L2 weight
                smem(),                                                  # score_aggr L2 bias
            ],
            out_specs=pl.BlockSpec((block_b, N, D), lambda b: (b, 0, 0)),
            scratch_shapes=[
                pltpu.VMEM((N, 3 * H * hd), jnp.float32),   # staged QKV
                pltpu.VMEM((N, H * hd), jnp.float32),       # concatenated heads
            ]),
        compiler_params=pltpu.CompilerParams(
            dimension_semantics=("parallel",)),
    )(h_fea, aux_att_score, w_qkv, w_out_flat, w1t, b1f, w2t, b2f)

    # Module returns aux_att_score unchanged.
    return h_wave, aux_att_score


def reference(h_fea, aux, wq, wk, wv, w1t, b1, w2t, b2, wout):
    """Plain-JAX replica of the PyTorch forward (for correctness checking)."""
    Q = jnp.einsum('bnd,hde->hbne', h_fea, wq)
    K = jnp.einsum('bnd,hde->hbne', h_fea, wk)
    V = jnp.einsum('bnd,hde->hbne', h_fea, wv)
    scores = jnp.einsum('hbne,hbme->hbnm', Q, K)
    compat = jnp.concatenate([scores, aux], axis=0)          # (2H, B, N, N)
    x = jnp.transpose(compat, (1, 2, 3, 0))                  # (B, N, N, 2H)
    hid = jax.nn.relu(x @ w1t.T + b1)
    attn = hid @ w2t.T + b2                                  # (B, N, N, H)
    attn = jnp.transpose(attn, (3, 0, 1, 2))                 # (H, B, N, N)
    p = jax.nn.softmax(attn, axis=-1)
    heads = jnp.einsum('hbnm,hbme->hbne', p, V)
    h_wave = jnp.einsum('hbne,hed->bnd', heads, wout)
    return h_wave


if __name__ == "__main__":
    # Small shapes consistent with the module: batch=2, seq=8, input_dim=32, heads=4.
    B, N, D, H = 2, 8, 32, 4
    hd = D // H

    key = jax.random.PRNGKey(0)
    keys = jax.random.split(key, 10)

    def uinit(k, shape, fan):
        s = 1.0 / math.sqrt(fan)
        return jax.random.uniform(k, shape, jnp.float32, -s, s)

    # Deterministic synthetic parameters (uniform(-1/sqrt(last_dim), ...) as in init_parameters).
    wq = uinit(keys[0], (H, D, hd), hd)
    wk = uinit(keys[1], (H, D, hd), hd)
    wv = uinit(keys[2], (H, D, hd), hd)
    w1t = uinit(keys[3], (2 * H, 2 * H), 2 * H)   # Linear(2H, 2H) weight, (out, in)
    b1 = uinit(keys[4], (2 * H,), 2 * H)
    w2t = uinit(keys[5], (H, 2 * H), 2 * H)       # Linear(2H, H) weight, (out, in)
    b2 = uinit(keys[6], (H,), H)
    wout = uinit(keys[7], (H, hd, D), D)

    h_fea = jax.random.normal(keys[8], (B, N, D), jnp.float32)
    aux_att_score = jax.random.normal(keys[9], (H, B, N, N), jnp.float32)

    h_wave, aux_out = synth_attention(h_fea, aux_att_score,
                                      wq, wk, wv, w1t, b1, w2t, b2, wout,
                                      block_b=1)   # grid=(2,): both v7x TCs busy
    jax.block_until_ready(h_wave)

    ref = reference(h_fea, aux_att_score, wq, wk, wv, w1t, b1, w2t, b2, wout)
    assert h_wave.shape == (B, N, D)
    assert jnp.allclose(h_wave, ref, atol=1e-4, rtol=1e-4), "mismatch vs reference"
    assert jnp.array_equal(aux_out, aux_att_score)
    print("KERNEL_OK")
</pallas_src>

<mosaic_0001>
module attributes {stable_mosaic.version = 11 : i64} {
  func.func @synth_attention_kernel(%arg0: i32, %arg1: memref<1x8x32xf32, #tpu.memory_space<vmem>>, %arg2: memref<4x1x8x8xf32, #tpu.memory_space<vmem>>, %arg3: memref<32x96xf32, #tpu.memory_space<vmem>>, %arg4: memref<32x32xf32, #tpu.memory_space<vmem>>, %arg5: memref<8x8xf32, #tpu.memory_space<smem>>, %arg6: memref<8xf32, #tpu.memory_space<smem>>, %arg7: memref<4x8xf32, #tpu.memory_space<smem>>, %arg8: memref<4xf32, #tpu.memory_space<smem>>, %arg9: memref<1x8x32xf32, #tpu.memory_space<vmem>>, %arg10: memref<8x96xf32, #tpu.memory_space<vmem>>, %arg11: memref<8x32xf32, #tpu.memory_space<vmem>>) attributes {dimension_semantics = [#tpu.dimension_semantics<parallel>], iteration_bounds = array<i64: 2>, scalar_prefetch = 0 : i64, scratch_operands = 2 : i64, tpu.core_type = #tpu.core_type<tc>, window_params = [{transform_indices = @transform_0, window_bounds = array<i64: 1, 8, 32>}, {transform_indices = @transform_1, window_bounds = array<i64: 4, 1, 8, 8>}, {pipeline_mode = #tpu.pipeline_mode<synchronous>, transform_indices = @transform_2, window_bounds = array<i64: 32, 96>}, {pipeline_mode = #tpu.pipeline_mode<synchronous>, transform_indices = @transform_3, window_bounds = array<i64: 32, 32>}, {transform_indices = @transform_4, window_bounds = array<i64: 8, 8>}, {transform_indices = @transform_5, window_bounds = array<i64: 8>}, {transform_indices = @transform_6, window_bounds = array<i64: 4, 8>}, {transform_indices = @transform_7, window_bounds = array<i64: 4>}, {transform_indices = @transform_8, window_bounds = array<i64: 1, 8, 32>}]} {
    %c0 = arith.constant 0 : index
    %c0_0 = arith.constant 0 : index
    %c0_1 = arith.constant 0 : index
    %0 = vector.load %arg1[%c0, %c0_0, %c0_1] : memref<1x8x32xf32, #tpu.memory_space<vmem>>, vector<1x8x32xf32>
    %1 = vector.shape_cast %0 : vector<1x8x32xf32> to vector<8x32xf32>
    %c0_2 = arith.constant 0 : index
    %c0_3 = arith.constant 0 : index
    %2 = vector.load %arg3[%c0_2, %c0_3] : memref<32x96xf32, #tpu.memory_space<vmem>>, vector<32x96xf32>
    %cst = arith.constant dense<0.000000e+00> : vector<8x96xf32>
    %3 = tpu.matmul %1, %2, %cst {dimension_numbers = #tpu.dot_dimension_numbers<[1], [0], [0], [1], [0, 0, 1, 1], [], []>} : vector<8x32xf32>, vector<32x96xf32>, vector<8x96xf32> -> vector<8x96xf32>
    %c0_4 = arith.constant 0 : index
    %c0_5 = arith.constant 0 : index
    %4 = vector.load %arg10[%c0_4, %c0_5] : memref<8x96xf32, #tpu.memory_space<vmem>>, vector<8x96xf32>
    tpu.vector_store %arg10[%c0_4, %c0_5], %3 {strides = array<i32>} : memref<8x96xf32, #tpu.memory_space<vmem>>, vector<8x96xf32>,
    %c0_6 = arith.constant 0 : index
    %c0_7 = arith.constant 0 : index
    %5 = vector.load %arg10[%c0_6, %c0_7] : memref<8x96xf32, #tpu.memory_space<vmem>>, vector<8x8xf32>
    %c0_8 = arith.constant 0 : index
    %c32 = arith.constant 32 : index
    %6 = vector.load %arg10[%c0_8, %c32] : memref<8x96xf32, #tpu.memory_space<vmem>>, vector<8x8xf32>
    %cst_9 = arith.constant dense<0.000000e+00> : vector<8x8xf32>
    %7 = tpu.matmul %5, %6, %cst_9 {dimension_numbers = #tpu.dot_dimension_numbers<[1], [1], [0], [0], [0, 0, 1, 0], [], []>} : vector<8x8xf32>, vector<8x8xf32>, vector<8x8xf32> -> vector<8x8xf32>
    %c0_10 = arith.constant 0 : index
    %c8 = arith.constant 8 : index
    %8 = vector.load %arg10[%c0_10, %c8] : memref<8x96xf32, #tpu.memory_space<vmem>>, vector<8x8xf32>
    %c0_11 = arith.constant 0 : index
    %c40 = arith.constant 40 : index
    %9 = vector.load %arg10[%c0_11, %c40] : memref<8x96xf32, #tpu.memory_space<vmem>>, vector<8x8xf32>
    %cst_12 = arith.constant dense<0.000000e+00> : vector<8x8xf32>
    %10 = tpu.matmul %8, %9, %cst_12 {dimension_numbers = #tpu.dot_dimension_numbers<[1], [1], [0], [0], [0, 0, 1, 0], [], []>} : vector<8x8xf32>, vector<8x8xf32>, vector<8x8xf32> -> vector<8x8xf32>
    %c0_13 = arith.constant 0 : index
    %c16 = arith.constant 16 : index
    %11 = vector.load %arg10[%c0_13, %c16] : memref<8x96xf32, #tpu.memory_space<vmem>>, vector<8x8xf32>
    %c0_14 = arith.constant 0 : index
    %c48 = arith.constant 48 : index
    %12 = vector.load %arg10[%c0_14, %c48] : memref<8x96xf32, #tpu.memory_space<vmem>>, vector<8x8xf32>
    %cst_15 = arith.constant dense<0.000000e+00> : vector<8x8xf32>
    %13 = tpu.matmul %11, %12, %cst_15 {dimension_numbers = #tpu.dot_dimension_numbers<[1], [1], [0], [0], [0, 0, 1, 0], [], []>} : vector<8x8xf32>, vector<8x8xf32>, vector<8x8xf32> -> vector<8x8xf32>
    %c0_16 = arith.constant 0 : index
    %c24 = arith.constant 24 : index
    %14 = vector.load %arg10[%c0_16, %c24] : memref<8x96xf32, #tpu.memory_space<vmem>>, vector<8x8xf32>
    %c0_17 = arith.constant 0 : index
    %c56 = arith.constant 56 : index
    %15 = vector.load %arg10[%c0_17, %c56] : memref<8x96xf32, #tpu.memory_space<vmem>>, vector<8x8xf32>
    %cst_18 = arith.constant dense<0.000000e+00> : vector<8x8xf32>
    %16 = tpu.matmul %14, %15, %cst_18 {dimension_numbers = #tpu.dot_dimension_numbers<[1], [1], [0], [0], [0, 0, 1, 0], [], []>} : vector<8x8xf32>, vector<8x8xf32>, vector<8x8xf32> -> vector<8x8xf32>
    %c0_19 = arith.constant 0 : index
    %c0_20 = arith.constant 0 : index
    %c0_21 = arith.constant 0 : index
    %c0_22 = arith.constant 0 : index
    %17 = vector.load %arg2[%c0_19, %c0_20, %c0_21, %c0_22] : memref<4x1x8x8xf32, #tpu.memory_space<vmem>>, vector<1x1x8x8xf32>
    %18 = vector.shape_cast %17 : vector<1x1x8x8xf32> to vector<8x8xf32>
    %c1 = arith.constant 1 : index
    %c0_23 = arith.constant 0 : index
    %c0_24 = arith.constant 0 : index
    %c0_25 = arith.constant 0 : index
    %19 = vector.load %arg2[%c1, %c0_23, %c0_24, %c0_25] : memref<4x1x8x8xf32, #tpu.memory_space<vmem>>, vector<1x1x8x8xf32>
    %20 = vector.shape_cast %19 : vector<1x1x8x8xf32> to vector<8x8xf32>
    %c2 = arith.constant 2 : index
    %c0_26 = arith.constant 0 : index
    %c0_27 = arith.constant 0 : index
    %c0_28 = arith.constant 0 : index
    %21 = vector.load %arg2[%c2, %c0_26, %c0_27, %c0_28] : memref<4x1x8x8xf32, #tpu.memory_space<vmem>>, vector<1x1x8x8xf32>
    %22 = vector.shape_cast %21 : vector<1x1x8x8xf32> to vector<8x8xf32>
    %c3 = arith.constant 3 : index
    %c0_29 = arith.constant 0 : index
    %c0_30 = arith.constant 0 : index
    %c0_31 = arith.constant 0 : index
    %23 = vector.load %arg2[%c3, %c0_29, %c0_30, %c0_31] : memref<4x1x8x8xf32, #tpu.memory_space<vmem>>, vector<1x1x8x8xf32>
    %24 = vector.shape_cast %23 : vector<1x1x8x8xf32> to vector<8x8xf32>
    %c0_32 = arith.constant 0 : index
    %c0_33 = arith.constant 0 : index
    %25 = memref.load %arg5[%c0_32, %c0_33] : memref<8x8xf32, #tpu.memory_space<smem>>
    %26 = vector.broadcast %25 : f32 to vector<8x8xf32>
    %27 = arith.mulf %7, %26 : vector<8x8xf32>
    %c0_34 = arith.constant 0 : index
    %c1_35 = arith.constant 1 : index
    %28 = memref.load %arg5[%c0_34, %c1_35] : memref<8x8xf32, #tpu.memory_space<smem>>
    %29 = vector.broadcast %28 : f32 to vector<8x8xf32>
    %30 = arith.mulf %10, %29 : vector<8x8xf32>
    %31 = arith.addf %27, %30 : vector<8x8xf32>
    %c0_36 = arith.constant 0 : index
    %c2_37 = arith.constant 2 : index
    %32 = memref.load %arg5[%c0_36, %c2_37] : memref<8x8xf32, #tpu.memory_space<smem>>
    %33 = vector.broadcast %32 : f32 to vector<8x8xf32>
    %34 = arith.mulf %13, %33 : vector<8x8xf32>
    %35 = arith.addf %31, %34 : vector<8x8xf32>
    %c0_38 = arith.constant 0 : index
    %c3_39 = arith.constant 3 : index
    %36 = memref.load %arg5[%c0_38, %c3_39] : memref<8x8xf32, #tpu.memory_space<smem>>
    %37 = vector.broadcast %36 : f32 to vector<8x8xf32>
    %38 = arith.mulf %16, %37 : vector<8x8xf32>
    %39 = arith.addf %35, %38 : vector<8x8xf32>
    %c0_40 = arith.constant 0 : index
    %c4 = arith.constant 4 : index
    %40 = memref.load %arg5[%c0_40, %c4] : memref<8x8xf32, #tpu.memory_space<smem>>
    %41 = vector.broadcast %40 : f32 to vector<8x8xf32>
    %42 = arith.mulf %18, %41 : vector<8x8xf32>
    %43 = arith.addf %39, %42 : vector<8x8xf32>
    %c0_41 = arith.constant 0 : index
    %c5 = arith.constant 5 : index
    %44 = memref.load %arg5[%c0_41, %c5] : memref<8x8xf32, #tpu.memory_space<smem>>
    %45 = vector.broadcast %44 : f32 to vector<8x8xf32>
    %46 = arith.mulf %20, %45 : vector<8x8xf32>
    %47 = arith.addf %43, %46 : vector<8x8xf32>
    %c0_42 = arith.constant 0 : index
    %c6 = arith.constant 6 : index
    %48 = memref.load %arg5[%c0_42, %c6] : memref<8x8xf32, #tpu.memory_space<smem>>
    %49 = vector.broadcast %48 : f32 to vector<8x8xf32>
    %50 = arith.mulf %22, %49 : vector<8x8xf32>
    %51 = arith.addf %47, %50 : vector<8x8xf32>
    %c0_43 = arith.constant 0 : index
    %c7 = arith.constant 7 : index
    %52 = memref.load %arg5[%c0_43, %c7] : memref<8x8xf32, #tpu.memory_space<smem>>
    %53 = vector.broadcast %52 : f32 to vector<8x8xf32>
    %54 = arith.mulf %24, %53 : vector<8x8xf32>
    %55 = arith.addf %51, %54 : vector<8x8xf32>
    %c0_44 = arith.constant 0 : index
    %56 = memref.load %arg6[%c0_44] : memref<8xf32, #tpu.memory_space<smem>>
    %57 = vector.broadcast %56 : f32 to vector<8x8xf32>
    %58 = arith.addf %55, %57 : vector<8x8xf32>
    %cst_45 = arith.constant 0.000000e+00 : f32
    %59 = vector.broadcast %cst_45 : f32 to vector<8x8xf32>
    %60 = arith.maximumf %58, %59 : vector<8x8xf32>
    %c0_46 = arith.constant 0 : index
    %c0_47 = arith.constant 0 : index
    %61 = memref.load %arg7[%c0_46, %c0_47] : memref<4x8xf32, #tpu.memory_space<smem>>
    %62 = vector.broadcast %61 : f32 to vector<8x8xf32>
    %63 = arith.mulf %60, %62 : vector<8x8xf32>
    %c1_48 = arith.constant 1 : index
    %c0_49 = arith.constant 0 : index
    %64 = memref.load %arg7[%c1_48, %c0_49] : memref<4x8xf32, #tpu.memory_space<smem>>
    %65 = vector.broadcast %64 : f32 to vector<8x8xf32>
    %66 = arith.mulf %60, %65 : vector<8x8xf32>
    %c2_50 = arith.constant 2 : index
    %c0_51 = arith.constant 0 : index
    %67 = memref.load %arg7[%c2_50, %c0_51] : memref<4x8xf32, #tpu.memory_space<smem>>
    %68 = vector.broadcast %67 : f32 to vector<8x8xf32>
    %69 = arith.mulf %60, %68 : vector<8x8xf32>
    %c3_52 = arith.constant 3 : index
    %c0_53 = arith.constant 0 : index
    %70 = memref.load %arg7[%c3_52, %c0_53] : memref<4x8xf32, #tpu.memory_space<smem>>
    %71 = vector.broadcast %70 : f32 to vector<8x8xf32>
    %72 = arith.mulf %60, %71 : vector<8x8xf32>
    %c1_54 = arith.constant 1 : index
    %c0_55 = arith.constant 0 : index
    %73 = memref.load %arg5[%c1_54, %c0_55] : memref<8x8xf32, #tpu.memory_space<smem>>
    %74 = vector.broadcast %73 : f32 to vector<8x8xf32>
    %75 = arith.mulf %7, %74 : vector<8x8xf32>
    %c1_56 = arith.constant 1 : index
    %c1_57 = arith.constant 1 : index
    %76 = memref.load %arg5[%c1_56, %c1_57] : memref<8x8xf32, #tpu.memory_space<smem>>
    %77 = vector.broadcast %76 : f32 to vector<8x8xf32>
    %78 = arith.mulf %10, %77 : vector<8x8xf32>
    %79 = arith.addf %75, %78 : vector<8x8xf32>
    %c1_58 = arith.constant 1 : index
    %c2_59 = arith.constant 2 : index
    %80 = memref.load %arg5[%c1_58, %c2_59] : memref<8x8xf32, #tpu.memory_space<smem>>
    %81 = vector.broadcast %80 : f32 to vector<8x8xf32>
    %82 = arith.mulf %13, %81 : vector<8x8xf32>
    %83 = arith.addf %79, %82 : vector<8x8xf32>
    %c1_60 = arith.constant 1 : index
    %c3_61 = arith.constant 3 : index
    %84 = memref.load %arg5[%c1_60, %c3_61] : memref<8x8xf32, #tpu.memory_space<smem>>
    %85 = vector.broadcast %84 : f32 to vector<8x8xf32>
    %86 = arith.mulf %16, %85 : vector<8x8xf32>
    %87 = arith.addf %83, %86 : vector<8x8xf32>
    %c1_62 = arith.constant 1 : index
    %c4_63 = arith.constant 4 : index
    %88 = memref.load %arg5[%c1_62, %c4_63] : memref<8x8xf32, #tpu.memory_space<smem>>
    %89 = vector.broadcast %88 : f32 to vector<8x8xf32>
    %90 = arith.mulf %18, %89 : vector<8x8xf32>
    %91 = arith.addf %87, %90 : vector<8x8xf32>
    %c1_64 = arith.constant 1 : index
    %c5_65 = arith.constant 5 : index
    %92 = memref.load %arg5[%c1_64, %c5_65] : memref<8x8xf32, #tpu.memory_space<smem>>
    %93 = vector.broadcast %92 : f32 to vector<8x8xf32>
    %94 = arith.mulf %20, %93 : vector<8x8xf32>
    %95 = arith.addf %91, %94 : vector<8x8xf32>
    %c1_66 = arith.constant 1 : index
    %c6_67 = arith.constant 6 : index
    %96 = memref.load %arg5[%c1_66, %c6_67] : memref<8x8xf32, #tpu.memory_space<smem>>
    %97 = vector.broadcast %96 : f32 to vector<8x8xf32>
    %98 = arith.mulf %22, %97 : vector<8x8xf32>
    %99 = arith.addf %95, %98 : vector<8x8xf32>
    %c1_68 = arith.constant 1 : index
    %c7_69 = arith.constant 7 : index
    %100 = memref.load %arg5[%c1_68, %c7_69] : memref<8x8xf32, #tpu.memory_space<smem>>
    %101 = vector.broadcast %100 : f32 to vector<8x8xf32>
    %102 = arith.mulf %24, %101 : vector<8x8xf32>
    %103 = arith.addf %99, %102 : vector<8x8xf32>
    %c1_70 = arith.constant 1 : index
    %104 = memref.load %arg6[%c1_70] : memref<8xf32, #tpu.memory_space<smem>>
    %105 = vector.broadcast %104 : f32 to vector<8x8xf32>
    %106 = arith.addf %103, %105 : vector<8x8xf32>
    %cst_71 = arith.constant 0.000000e+00 : f32
    %107 = vector.broadcast %cst_71 : f32 to vector<8x8xf32>
    %108 = arith.maximumf %106, %107 : vector<8x8xf32>
    %c0_72 = arith.constant 0 : index
    %c1_73 = arith.constant 1 : index
    %109 = memref.load %arg7[%c0_72, %c1_73] : memref<4x8xf32, #tpu.memory_space<smem>>
    %110 = vector.broadcast %109 : f32 to vector<8x8xf32>
    %111 = arith.mulf %108, %110 : vector<8x8xf32>
    %112 = arith.addf %63, %111 : vector<8x8xf32>
    %c1_74 = arith.constant 1 : index
    %c1_75 = arith.constant 1 : index
    %113 = memref.load %arg7[%c1_74, %c1_75] : memref<4x8xf32, #tpu.memory_space<smem>>
    %114 = vector.broadcast %113 : f32 to vector<8x8xf32>
    %115 = arith.mulf %108, %114 : vector<8x8xf32>
    %116 = arith.addf %66, %115 : vector<8x8xf32>
    %c2_76 = arith.constant 2 : index
    %c1_77 = arith.constant 1 : index
    %117 = memref.load %arg7[%c2_76, %c1_77] : memref<4x8xf32, #tpu.memory_space<smem>>
    %118 = vector.broadcast %117 : f32 to vector<8x8xf32>
    %119 = arith.mulf %108, %118 : vector<8x8xf32>
    %120 = arith.addf %69, %119 : vector<8x8xf32>
    %c3_78 = arith.constant 3 : index
    %c1_79 = arith.constant 1 : index
    %121 = memref.load %arg7[%c3_78, %c1_79] : memref<4x8xf32, #tpu.memory_space<smem>>
    %122 = vector.broadcast %121 : f32 to vector<8x8xf32>
    %123 = arith.mulf %108, %122 : vector<8x8xf32>
    %124 = arith.addf %72, %123 : vector<8x8xf32>
    %c2_80 = arith.constant 2 : index
    %c0_81 = arith.constant 0 : index
    %125 = memref.load %arg5[%c2_80, %c0_81] : memref<8x8xf32, #tpu.memory_space<smem>>
    %126 = vector.broadcast %125 : f32 to vector<8x8xf32>
    %127 = arith.mulf %7, %126 : vector<8x8xf32>
    %c2_82 = arith.constant 2 : index
    %c1_83 = arith.constant 1 : index
    %128 = memref.load %arg5[%c2_82, %c1_83] : memref<8x8xf32, #tpu.memory_space<smem>>
    %129 = vector.broadcast %128 : f32 to vector<8x8xf32>
    %130 = arith.mulf %10, %129 : vector<8x8xf32>
    %131 = arith.addf %127, %130 : vector<8x8xf32>
    %c2_84 = arith.constant 2 : index
    %c2_85 = arith.constant 2 : index
    %132 = memref.load %arg5[%c2_84, %c2_85] : memref<8x8xf32, #tpu.memory_space<smem>>
    %133 = vector.broadcast %132 : f32 to vector<8x8xf32>
    %134 = arith.mulf %13, %133 : vector<8x8xf32>
    %135 = arith.addf %131, %134 : vector<8x8xf32>
    %c2_86 = arith.constant 2 : index
    %c3_87 = arith.constant 3 : index
    %136 = memref.load %arg5[%c2_86, %c3_87] : memref<8x8xf32, #tpu.memory_space<smem>>
    %137 = vector.broadcast %136 : f32 to vector<8x8xf32>
    %138 = arith.mulf %16, %137 : vector<8x8xf32>
    %139 = arith.addf %135, %138 : vector<8x8xf32>
    %c2_88 = arith.constant 2 : index
    %c4_89 = arith.constant 4 : index
    %140 = memref.load %arg5[%c2_88, %c4_89] : memref<8x8xf32, #tpu.memory_space<smem>>
    %141 = vector.broadcast %140 : f32 to vector<8x8xf32>
    %142 = arith.mulf %18, %141 : vector<8x8xf32>
    %143 = arith.addf %139, %142 : vector<8x8xf32>
    %c2_90 = arith.constant 2 : index
    %c5_91 = arith.constant 5 : index
    %144 = memref.load %arg5[%c2_90, %c5_91] : memref<8x8xf32, #tpu.memory_space<smem>>
    %145 = vector.broadcast %144 : f32 to vector<8x8xf32>
    %146 = arith.mulf %20, %145 : vector<8x8xf32>
    %147 = arith.addf %143, %146 : vector<8x8xf32>
    %c2_92 = arith.constant 2 : index
    %c6_93 = arith.constant 6 : index
    %148 = memref.load %arg5[%c2_92, %c6_93] : memref<8x8xf32, #tpu.memory_space<smem>>
    %149 = vector.broadcast %148 : f32 to vector<8x8xf32>
    %150 = arith.mulf %22, %149 : vector<8x8xf32>
    %151 = arith.addf %147, %150 : vector<8x8xf32>
    %c2_94 = arith.constant 2 : index
    %c7_95 = arith.constant 7 : index
    %152 = memref.load %arg5[%c2_94, %c7_95] : memref<8x8xf32, #tpu.memory_space<smem>>
    %153 = vector.broadcast %152 : f32 to vector<8x8xf32>
    %154 = arith.mulf %24, %153 : vector<8x8xf32>
    %155 = arith.addf %151, %154 : vector<8x8xf32>
    %c2_96 = arith.constant 2 : index
    %156 = memref.load %arg6[%c2_96] : memref<8xf32, #tpu.memory_space<smem>>
    %157 = vector.broadcast %156 : f32 to vector<8x8xf32>
    %158 = arith.addf %155, %157 : vector<8x8xf32>
    %cst_97 = arith.constant 0.000000e+00 : f32
    %159 = vector.broadcast %cst_97 : f32 to vector<8x8xf32>
    %160 = arith.maximumf %158, %159 : vector<8x8xf32>
    %c0_98 = arith.constant 0 : index
    %c2_99 = arith.constant 2 : index
    %161 = memref.load %arg7[%c0_98, %c2_99] : memref<4x8xf32, #tpu.memory_space<smem>>
    %162 = vector.broadcast %161 : f32 to vector<8x8xf32>
    %163 = arith.mulf %160, %162 : vector<8x8xf32>
    %164 = arith.addf %112, %163 : vector<8x8xf32>
    %c1_100 = arith.constant 1 : index
    %c2_101 = arith.constant 2 : index
    %165 = memref.load %arg7[%c1_100, %c2_101] : memref<4x8xf32, #tpu.memory_space<smem>>
    %166 = vector.broadcast %165 : f32 to vector<8x8xf32>
    %167 = arith.mulf %160, %166 : vector<8x8xf32>
    %168 = arith.addf %116, %167 : vector<8x8xf32>
    %c2_102 = arith.constant 2 : index
    %c2_103 = arith.constant 2 : index
    %169 = memref.load %arg7[%c2_102, %c2_103] : memref<4x8xf32, #tpu.memory_space<smem>>
    %170 = vector.broadcast %169 : f32 to vector<8x8xf32>
    %171 = arith.mulf %160, %170 : vector<8x8xf32>
    %172 = arith.addf %120, %171 : vector<8x8xf32>
    %c3_104 = arith.constant 3 : index
    %c2_105 = arith.constant 2 : index
    %173 = memref.load %arg7[%c3_104, %c2_105] : memref<4x8xf32, #tpu.memory_space<smem>>
    %174 = vector.broadcast %173 : f32 to vector<8x8xf32>
    %175 = arith.mulf %160, %174 : vector<8x8xf32>
    %176 = arith.addf %124, %175 : vector<8x8xf32>
    %c3_106 = arith.constant 3 : index
    %c0_107 = arith.constant 0 : index
    %177 = memref.load %arg5[%c3_106, %c0_107] : memref<8x8xf32, #tpu.memory_space<smem>>
    %178 = vector.broadcast %177 : f32 to vector<8x8xf32>
    %179 = arith.mulf %7, %178 : vector<8x8xf32>
    %c3_108 = arith.constant 3 : index
    %c1_109 = arith.constant 1 : index
    %180 = memref.load %arg5[%c3_108, %c1_109] : memref<8x8xf32, #tpu.memory_space<smem>>
    %181 = vector.broadcast %180 : f32 to vector<8x8xf32>
    %182 = arith.mulf %10, %181 : vector<8x8xf32>
    %183 = arith.addf %179, %182 : vector<8x8xf32>
    %c3_110 = arith.constant 3 : index
    %c2_111 = arith.constant 2 : index
    %184 = memref.load %arg5[%c3_110, %c2_111] : memref<8x8xf32, #tpu.memory_space<smem>>
    %185 = vector.broadcast %184 : f32 to vector<8x8xf32>
    %186 = arith.mulf %13, %185 : vector<8x8xf32>
    %187 = arith.addf %183, %186 : vector<8x8xf32>
    %c3_112 = arith.constant 3 : index
    %c3_113 = arith.constant 3 : index
    %188 = memref.load %arg5[%c3_112, %c3_113] : memref<8x8xf32, #tpu.memory_space<smem>>
    %189 = vector.broadcast %188 : f32 to vector<8x8xf32>
    %190 = arith.mulf %16, %189 : vector<8x8xf32>
    %191 = arith.addf %187, %190 : vector<8x8xf32>
    %c3_114 = arith.constant 3 : index
    %c4_115 = arith.constant 4 : index
    %192 = memref.load %arg5[%c3_114, %c4_115] : memref<8x8xf32, #tpu.memory_space<smem>>
    %193 = vector.broadcast %192 : f32 to vector<8x8xf32>
    %194 = arith.mulf %18, %193 : vector<8x8xf32>
    %195 = arith.addf %191, %194 : vector<8x8xf32>
    %c3_116 = arith.constant 3 : index
    %c5_117 = arith.constant 5 : index
    %196 = memref.load %arg5[%c3_116, %c5_117] : memref<8x8xf32, #tpu.memory_space<smem>>
    %197 = vector.broadcast %196 : f32 to vector<8x8xf32>
    %198 = arith.mulf %20, %197 : vector<8x8xf32>
    %199 = arith.addf %195, %198 : vector<8x8xf32>
    %c3_118 = arith.constant 3 : index
    %c6_119 = arith.constant 6 : index
    %200 = memref.load %arg5[%c3_118, %c6_119] : memref<8x8xf32, #tpu.memory_space<smem>>
    %201 = vector.broadcast %200 : f32 to vector<8x8xf32>
    %202 = arith.mulf %22, %201 : vector<8x8xf32>
    %203 = arith.addf %199, %202 : vector<8x8xf32>
    %c3_120 = arith.constant 3 : index
    %c7_121 = arith.constant 7 : index
    %204 = memref.load %arg5[%c3_120, %c7_121] : memref<8x8xf32, #tpu.memory_space<smem>>
    %205 = vector.broadcast %204 : f32 to vector<8x8xf32>
    %206 = arith.mulf %24, %205 : vector<8x8xf32>
    %207 = arith.addf %203, %206 : vector<8x8xf32>
    %c3_122 = arith.constant 3 : index
    %208 = memref.load %arg6[%c3_122] : memref<8xf32, #tpu.memory_space<smem>>
    %209 = vector.broadcast %208 : f32 to vector<8x8xf32>
    %210 = arith.addf %207, %209 : vector<8x8xf32>
    %cst_123 = arith.constant 0.000000e+00 : f32
    %211 = vector.broadcast %cst_123 : f32 to vector<8x8xf32>
    %212 = arith.maximumf %210, %211 : vector<8x8xf32>
    %c0_124 = arith.constant 0 : index
    %c3_125 = arith.constant 3 : index
    %213 = memref.load %arg7[%c0_124, %c3_125] : memref<4x8xf32, #tpu.memory_space<smem>>
    %214 = vector.broadcast %213 : f32 to vector<8x8xf32>
    %215 = arith.mulf %212, %214 : vector<8x8xf32>
    %216 = arith.addf %164, %215 : vector<8x8xf32>
    %c1_126 = arith.constant 1 : index
    %c3_127 = arith.constant 3 : index
    %217 = memref.load %arg7[%c1_126, %c3_127] : memref<4x8xf32, #tpu.memory_space<smem>>
    %218 = vector.broadcast %217 : f32 to vector<8x8xf32>
    %219 = arith.mulf %212, %218 : vector<8x8xf32>
    %220 = arith.addf %168, %219 : vector<8x8xf32>
    %c2_128 = arith.constant 2 : index
    %c3_129 = arith.constant 3 : index
    %221 = memref.load %arg7[%c2_128, %c3_129] : memref<4x8xf32, #tpu.memory_space<smem>>
    %222 = vector.broadcast %221 : f32 to vector<8x8xf32>
    %223 = arith.mulf %212, %222 : vector<8x8xf32>
    %224 = arith.addf %172, %223 : vector<8x8xf32>
    %c3_130 = arith.constant 3 : index
    %c3_131 = arith.constant 3 : index
    %225 = memref.load %arg7[%c3_130, %c3_131] : memref<4x8xf32, #tpu.memory_space<smem>>
    %226 = vector.broadcast %225 : f32 to vector<8x8xf32>
    %227 = arith.mulf %212, %226 : vector<8x8xf32>
    %228 = arith.addf %176, %227 : vector<8x8xf32>
    %c4_132 = arith.constant 4 : index
    %c0_133 = arith.constant 0 : index
    %229 = memref.load %arg5[%c4_132, %c0_133] : memref<8x8xf32, #tpu.memory_space<smem>>
    %230 = vector.broadcast %229 : f32 to vector<8x8xf32>
    %231 = arith.mulf %7, %230 : vector<8x8xf32>
    %c4_134 = arith.constant 4 : index
    %c1_135 = arith.constant 1 : index
    %232 = memref.load %arg5[%c4_134, %c1_135] : memref<8x8xf32, #tpu.memory_space<smem>>
    %233 = vector.broadcast %232 : f32 to vector<8x8xf32>
    %234 = arith.mulf %10, %233 : vector<8x8xf32>
    %235 = arith.addf %231, %234 : vector<8x8xf32>
    %c4_136 = arith.constant 4 : index
    %c2_137 = arith.constant 2 : index
    %236 = memref.load %arg5[%c4_136, %c2_137] : memref<8x8xf32, #tpu.memory_space<smem>>
    %237 = vector.broadcast %236 : f32 to vector<8x8xf32>
    %238 = arith.mulf %13, %237 : vector<8x8xf32>
    %239 = arith.addf %235, %238 : vector<8x8xf32>
    %c4_138 = arith.constant 4 : index
    %c3_139 = arith.constant 3 : index
    %240 = memref.load %arg5[%c4_138, %c3_139] : memref<8x8xf32, #tpu.memory_space<smem>>
    %241 = vector.broadcast %240 : f32 to vector<8x8xf32>
    %242 = arith.mulf %16, %241 : vector<8x8xf32>
    %243 = arith.addf %239, %242 : vector<8x8xf32>
    %c4_140 = arith.constant 4 : index
    %c4_141 = arith.constant 4 : index
    %244 = memref.load %arg5[%c4_140, %c4_141] : memref<8x8xf32, #tpu.memory_space<smem>>
    %245 = vector.broadcast %244 : f32 to vector<8x8xf32>
    %246 = arith.mulf %18, %245 : vector<8x8xf32>
    %247 = arith.addf %243, %246 : vector<8x8xf32>
    %c4_142 = arith.constant 4 : index
    %c5_143 = arith.constant 5 : index
    %248 = memref.load %arg5[%c4_142, %c5_143] : memref<8x8xf32, #tpu.memory_space<smem>>
    %249 = vector.broadcast %248 : f32 to vector<8x8xf32>
    %250 = arith.mulf %20, %249 : vector<8x8xf32>
    %251 = arith.addf %247, %250 : vector<8x8xf32>
    %c4_144 = arith.constant 4 : index
    %c6_145 = arith.constant 6 : index
    %252 = memref.load %arg5[%c4_144, %c6_145] : memref<8x8xf32, #tpu.memory_space<smem>>
    %253 = vector.broadcast %252 : f32 to vector<8x8xf32>
    %254 = arith.mulf %22, %253 : vector<8x8xf32>
    %255 = arith.addf %251, %254 : vector<8x8xf32>
    %c4_146 = arith.constant 4 : index
    %c7_147 = arith.constant 7 : index
    %256 = memref.load %arg5[%c4_146, %c7_147] : memref<8x8xf32, #tpu.memory_space<smem>>
    %257 = vector.broadcast %256 : f32 to vector<8x8xf32>
    %258 = arith.mulf %24, %257 : vector<8x8xf32>
    %259 = arith.addf %255, %258 : vector<8x8xf32>
    %c4_148 = arith.constant 4 : index
    %260 = memref.load %arg6[%c4_148] : memref<8xf32, #tpu.memory_space<smem>>
    %261 = vector.broadcast %260 : f32 to vector<8x8xf32>
    %262 = arith.addf %259, %261 : vector<8x8xf32>
    %cst_149 = arith.constant 0.000000e+00 : f32
    %263 = vector.broadcast %cst_149 : f32 to vector<8x8xf32>
    %264 = arith.maximumf %262, %263 : vector<8x8xf32>
    %c0_150 = arith.constant 0 : index
    %c4_151 = arith.constant 4 : index
    %265 = memref.load %arg7[%c0_150, %c4_151] : memref<4x8xf32, #tpu.memory_space<smem>>
    %266 = vector.broadcast %265 : f32 to vector<8x8xf32>
    %267 = arith.mulf %264, %266 : vector<8x8xf32>
    %268 = arith.addf %216, %267 : vector<8x8xf32>
    %c1_152 = arith.constant 1 : index
    %c4_153 = arith.constant 4 : index
    %269 = memref.load %arg7[%c1_152, %c4_153] : memref<4x8xf32, #tpu.memory_space<smem>>
    %270 = vector.broadcast %269 : f32 to vector<8x8xf32>
    %271 = arith.mulf %264, %270 : vector<8x8xf32>
    %272 = arith.addf %220, %271 : vector<8x8xf32>
    %c2_154 = arith.constant 2 : index
    %c4_155 = arith.constant 4 : index
    %273 = memref.load %arg7[%c2_154, %c4_155] : memref<4x8xf32, #tpu.memory_space<smem>>
    %274 = vector.broadcast %273 : f32 to vector<8x8xf32>
    %275 = arith.mulf %264, %274 : vector<8x8xf32>
    %276 = arith.addf %224, %275 : vector<8x8xf32>
    %c3_156 = arith.constant 3 : index
    %c4_157 = arith.constant 4 : index
    %277 = memref.load %arg7[%c3_156, %c4_157] : memref<4x8xf32, #tpu.memory_space<smem>>
    %278 = vector.broadcast %277 : f32 to vector<8x8xf32>
    %279 = arith.mulf %264, %278 : vector<8x8xf32>
    %280 = arith.addf %228, %279 : vector<8x8xf32>
    %c5_158 = arith.constant 5 : index
    %c0_159 = arith.constant 0 : index
    %281 = memref.load %arg5[%c5_158, %c0_159] : memref<8x8xf32, #tpu.memory_space<smem>>
    %282 = vector.broadcast %281 : f32 to vector<8x8xf32>
    %283 = arith.mulf %7, %282 : vector<8x8xf32>
    %c5_160 = arith.constant 5 : index
    %c1_161 = arith.constant 1 : index
    %284 = memref.load %arg5[%c5_160, %c1_161] : memref<8x8xf32, #tpu.memory_space<smem>>
    %285 = vector.broadcast %284 : f32 to vector<8x8xf32>
    %286 = arith.mulf %10, %285 : vector<8x8xf32>
    %287 = arith.addf %283, %286 : vector<8x8xf32>
    %c5_162 = arith.constant 5 : index
    %c2_163 = arith.constant 2 : index
    %288 = memref.load %arg5[%c5_162, %c2_163] : memref<8x8xf32, #tpu.memory_space<smem>>
    %289 = vector.broadcast %288 : f32 to vector<8x8xf32>
    %290 = arith.mulf %13, %289 : vector<8x8xf32>
    %291 = arith.addf %287, %290 : vector<8x8xf32>
    %c5_164 = arith.constant 5 : index
    %c3_165 = arith.constant 3 : index
    %292 = memref.load %arg5[%c5_164, %c3_165] : memref<8x8xf32, #tpu.memory_space<smem>>
    %293 = vector.broadcast %292 : f32 to vector<8x8xf32>
    %294 = arith.mulf %16, %293 : vector<8x8xf32>
    %295 = arith.addf %291, %294 : vector<8x8xf32>
    %c5_166 = arith.constant 5 : index
    %c4_167 = arith.constant 4 : index
    %296 = memref.load %arg5[%c5_166, %c4_167] : memref<8x8xf32, #tpu.memory_space<smem>>
    %297 = vector.broadcast %296 : f32 to vector<8x8xf32>
    %298 = arith.mulf %18, %297 : vector<8x8xf32>
    %299 = arith.addf %295, %298 : vector<8x8xf32>
    %c5_168 = arith.constant 5 : index
    %c5_169 = arith.constant 5 : index
    %300 = memref.load %arg5[%c5_168, %c5_169] : memref<8x8xf32, #tpu.memory_space<smem>>
    %301 = vector.broadcast %300 : f32 to vector<8x8xf32>
    %302 = arith.mulf %20, %301 : vector<8x8xf32>
    %303 = arith.addf %299, %302 : vector<8x8xf32>
    %c5_170 = arith.constant 5 : index
    %c6_171 = arith.constant 6 : index
    %304 = memref.load %arg5[%c5_170, %c6_171] : memref<8x8xf32, #tpu.memory_space<smem>>
    %305 = vector.broadcast %304 : f32 to vector<8x8xf32>
    %306 = arith.mulf %22, %305 : vector<8x8xf32>
    %307 = arith.addf %303, %306 : vector<8x8xf32>
    %c5_172 = arith.constant 5 : index
    %c7_173 = arith.constant 7 : index
    %308 = memref.load %arg5[%c5_172, %c7_173] : memref<8x8xf32, #tpu.memory_space<smem>>
    %309 = vector.broadcast %308 : f32 to vector<8x8xf32>
    %310 = arith.mulf %24, %309 : vector<8x8xf32>
    %311 = arith.addf %307, %310 : vector<8x8xf32>
    %c5_174 = arith.constant 5 : index
    %312 = memref.load %arg6[%c5_174] : memref<8xf32, #tpu.memory_space<smem>>
    %313 = vector.broadcast %312 : f32 to vector<8x8xf32>
    %314 = arith.addf %311, %313 : vector<8x8xf32>
    %cst_175 = arith.constant 0.000000e+00 : f32
    %315 = vector.broadcast %cst_175 : f32 to vector<8x8xf32>
    %316 = arith.maximumf %314, %315 : vector<8x8xf32>
    %c0_176 = arith.constant 0 : index
    %c5_177 = arith.constant 5 : index
    %317 = memref.load %arg7[%c0_176, %c5_177] : memref<4x8xf32, #tpu.memory_space<smem>>
    %318 = vector.broadcast %317 : f32 to vector<8x8xf32>
    %319 = arith.mulf %316, %318 : vector<8x8xf32>
    %320 = arith.addf %268, %319 : vector<8x8xf32>
    %c1_178 = arith.constant 1 : index
    %c5_179 = arith.constant 5 : index
    %321 = memref.load %arg7[%c1_178, %c5_179] : memref<4x8xf32, #tpu.memory_space<smem>>
    %322 = vector.broadcast %321 : f32 to vector<8x8xf32>
    %323 = arith.mulf %316, %322 : vector<8x8xf32>
    %324 = arith.addf %272, %323 : vector<8x8xf32>
    %c2_180 = arith.constant 2 : index
    %c5_181 = arith.constant 5 : index
    %325 = memref.load %arg7[%c2_180, %c5_181] : memref<4x8xf32, #tpu.memory_space<smem>>
    %326 = vector.broadcast %325 : f32 to vector<8x8xf32>
    %327 = arith.mulf %316, %326 : vector<8x8xf32>
    %328 = arith.addf %276, %327 : vector<8x8xf32>
    %c3_182 = arith.constant 3 : index
    %c5_183 = arith.constant 5 : index
    %329 = memref.load %arg7[%c3_182, %c5_183] : memref<4x8xf32, #tpu.memory_space<smem>>
    %330 = vector.broadcast %329 : f32 to vector<8x8xf32>
    %331 = arith.mulf %316, %330 : vector<8x8xf32>
    %332 = arith.addf %280, %331 : vector<8x8xf32>
    %c6_184 = arith.constant 6 : index
    %c0_185 = arith.constant 0 : index
    %333 = memref.load %arg5[%c6_184, %c0_185] : memref<8x8xf32, #tpu.memory_space<smem>>
    %334 = vector.broadcast %333 : f32 to vector<8x8xf32>
    %335 = arith.mulf %7, %334 : vector<8x8xf32>
    %c6_186 = arith.constant 6 : index
    %c1_187 = arith.constant 1 : index
    %336 = memref.load %arg5[%c6_186, %c1_187] : memref<8x8xf32, #tpu.memory_space<smem>>
    %337 = vector.broadcast %336 : f32 to vector<8x8xf32>
    %338 = arith.mulf %10, %337 : vector<8x8xf32>
    %339 = arith.addf %335, %338 : vector<8x8xf32>
    %c6_188 = arith.constant 6 : index
    %c2_189 = arith.constant 2 : index
    %340 = memref.load %arg5[%c6_188, %c2_189] : memref<8x8xf32, #tpu.memory_space<smem>>
    %341 = vector.broadcast %340 : f32 to vector<8x8xf32>
    %342 = arith.mulf %13, %341 : vector<8x8xf32>
    %343 = arith.addf %339, %342 : vector<8x8xf32>
    %c6_190 = arith.constant 6 : index
    %c3_191 = arith.constant 3 : index
    %344 = memref.load %arg5[%c6_190, %c3_191] : memref<8x8xf32, #tpu.memory_space<smem>>
    %345 = vector.broadcast %344 : f32 to vector<8x8xf32>
    %346 = arith.mulf %16, %345 : vector<8x8xf32>
    %347 = arith.addf %343, %346 : vector<8x8xf32>
    %c6_192 = arith.constant 6 : index
    %c4_193 = arith.constant 4 : index
    %348 = memref.load %arg5[%c6_192, %c4_193] : memref<8x8xf32, #tpu.memory_space<smem>>
    %349 = vector.broadcast %348 : f32 to vector<8x8xf32>
    %350 = arith.mulf %18, %349 : vector<8x8xf32>
    %351 = arith.addf %347, %350 : vector<8x8xf32>
    %c6_194 = arith.constant 6 : index
    %c5_195 = arith.constant 5 : index
    %352 = memref.load %arg5[%c6_194, %c5_195] : memref<8x8xf32, #tpu.memory_space<smem>>
    %353 = vector.broadcast %352 : f32 to vector<8x8xf32>
    %354 = arith.mulf %20, %353 : vector<8x8xf32>
    %355 = arith.addf %351, %354 : vector<8x8xf32>
    %c6_196 = arith.constant 6 : index
    %c6_197 = arith.constant 6 : index
    %356 = memref.load %arg5[%c6_196, %c6_197] : memref<8x8xf32, #tpu.memory_space<smem>>
    %357 = vector.broadcast %356 : f32 to vector<8x8xf32>
    %358 = arith.mulf %22, %357 : vector<8x8xf32>
    %359 = arith.addf %355, %358 : vector<8x8xf32>
    %c6_198 = arith.constant 6 : index
    %c7_199 = arith.constant 7 : index
    %360 = memref.load %arg5[%c6_198, %c7_199] : memref<8x8xf32, #tpu.memory_space<smem>>
    %361 = vector.broadcast %360 : f32 to vector<8x8xf32>
    %362 = arith.mulf %24, %361 : vector<8x8xf32>
    %363 = arith.addf %359, %362 : vector<8x8xf32>
    %c6_200 = arith.constant 6 : index
    %364 = memref.load %arg6[%c6_200] : memref<8xf32, #tpu.memory_space<smem>>
    %365 = vector.broadcast %364 : f32 to vector<8x8xf32>
    %366 = arith.addf %363, %365 : vector<8x8xf32>
    %cst_201 = arith.constant 0.000000e+00 : f32
    %367 = vector.broadcast %cst_201 : f32 to vector<8x8xf32>
    %368 = arith.maximumf %366, %367 : vector<8x8xf32>
    %c0_202 = arith.constant 0 : index
    %c6_203 = arith.constant 6 : index
    %369 = memref.load %arg7[%c0_202, %c6_203] : memref<4x8xf32, #tpu.memory_space<smem>>
    %370 = vector.broadcast %369 : f32 to vector<8x8xf32>
    %371 = arith.mulf %368, %370 : vector<8x8xf32>
    %372 = arith.addf %320, %371 : vector<8x8xf32>
    %c1_204 = arith.constant 1 : index
    %c6_205 = arith.constant 6 : index
    %373 = memref.load %arg7[%c1_204, %c6_205] : memref<4x8xf32, #tpu.memory_space<smem>>
    %374 = vector.broadcast %373 : f32 to vector<8x8xf32>
    %375 = arith.mulf %368, %374 : vector<8x8xf32>
    %376 = arith.addf %324, %375 : vector<8x8xf32>
    %c2_206 = arith.constant 2 : index
    %c6_207 = arith.constant 6 : index
    %377 = memref.load %arg7[%c2_206, %c6_207] : memref<4x8xf32, #tpu.memory_space<smem>>
    %378 = vector.broadcast %377 : f32 to vector<8x8xf32>
    %379 = arith.mulf %368, %378 : vector<8x8xf32>
    %380 = arith.addf %328, %379 : vector<8x8xf32>
    %c3_208 = arith.constant 3 : index
    %c6_209 = arith.constant 6 : index
    %381 = memref.load %arg7[%c3_208, %c6_209] : memref<4x8xf32, #tpu.memory_space<smem>>
    %382 = vector.broadcast %381 : f32 to vector<8x8xf32>
    %383 = arith.mulf %368, %382 : vector<8x8xf32>
    %384 = arith.addf %332, %383 : vector<8x8xf32>
    %c7_210 = arith.constant 7 : index
    %c0_211 = arith.constant 0 : index
    %385 = memref.load %arg5[%c7_210, %c0_211] : memref<8x8xf32, #tpu.memory_space<smem>>
    %386 = vector.broadcast %385 : f32 to vector<8x8xf32>
    %387 = arith.mulf %7, %386 : vector<8x8xf32>
    %c7_212 = arith.constant 7 : index
    %c1_213 = arith.constant 1 : index
    %388 = memref.load %arg5[%c7_212, %c1_213] : memref<8x8xf32, #tpu.memory_space<smem>>
    %389 = vector.broadcast %388 : f32 to vector<8x8xf32>
    %390 = arith.mulf %10, %389 : vector<8x8xf32>
    %391 = arith.addf %387, %390 : vector<8x8xf32>
    %c7_214 = arith.constant 7 : index
    %c2_215 = arith.constant 2 : index
    %392 = memref.load %arg5[%c7_214, %c2_215] : memref<8x8xf32, #tpu.memory_space<smem>>
    %393 = vector.broadcast %392 : f32 to vector<8x8xf32>
    %394 = arith.mulf %13, %393 : vector<8x8xf32>
    %395 = arith.addf %391, %394 : vector<8x8xf32>
    %c7_216 = arith.constant 7 : index
    %c3_217 = arith.constant 3 : index
    %396 = memref.load %arg5[%c7_216, %c3_217] : memref<8x8xf32, #tpu.memory_space<smem>>
    %397 = vector.broadcast %396 : f32 to vector<8x8xf32>
    %398 = arith.mulf %16, %397 : vector<8x8xf32>
    %399 = arith.addf %395, %398 : vector<8x8xf32>
    %c7_218 = arith.constant 7 : index
    %c4_219 = arith.constant 4 : index
    %400 = memref.load %arg5[%c7_218, %c4_219] : memref<8x8xf32, #tpu.memory_space<smem>>
    %401 = vector.broadcast %400 : f32 to vector<8x8xf32>
    %402 = arith.mulf %18, %401 : vector<8x8xf32>
    %403 = arith.addf %399, %402 : vector<8x8xf32>
    %c7_220 = arith.constant 7 : index
    %c5_221 = arith.constant 5 : index
    %404 = memref.load %arg5[%c7_220, %c5_221] : memref<8x8xf32, #tpu.memory_space<smem>>
    %405 = vector.broadcast %404 : f32 to vector<8x8xf32>
    %406 = arith.mulf %20, %405 : vector<8x8xf32>
    %407 = arith.addf %403, %406 : vector<8x8xf32>
    %c7_222 = arith.constant 7 : index
    %c6_223 = arith.constant 6 : index
    %408 = memref.load %arg5[%c7_222, %c6_223] : memref<8x8xf32, #tpu.memory_space<smem>>
    %409 = vector.broadcast %408 : f32 to vector<8x8xf32>
    %410 = arith.mulf %22, %409 : vector<8x8xf32>
    %411 = arith.addf %407, %410 : vector<8x8xf32>
    %c7_224 = arith.constant 7 : index
    %c7_225 = arith.constant 7 : index
    %412 = memref.load %arg5[%c7_224, %c7_225] : memref<8x8xf32, #tpu.memory_space<smem>>
    %413 = vector.broadcast %412 : f32 to vector<8x8xf32>
    %414 = arith.mulf %24, %413 : vector<8x8xf32>
    %415 = arith.addf %411, %414 : vector<8x8xf32>
    %c7_226 = arith.constant 7 : index
    %416 = memref.load %arg6[%c7_226] : memref<8xf32, #tpu.memory_space<smem>>
    %417 = vector.broadcast %416 : f32 to vector<8x8xf32>
    %418 = arith.addf %415, %417 : vector<8x8xf32>
    %cst_227 = arith.constant 0.000000e+00 : f32
    %419 = vector.broadcast %cst_227 : f32 to vector<8x8xf32>
    %420 = arith.maximumf %418, %419 : vector<8x8xf32>
    %c0_228 = arith.constant 0 : index
    %c7_229 = arith.constant 7 : index
    %421 = memref.load %arg7[%c0_228, %c7_229] : memref<4x8xf32, #tpu.memory_space<smem>>
    %422 = vector.broadcast %421 : f32 to vector<8x8xf32>
    %423 = arith.mulf %420, %422 : vector<8x8xf32>
    %424 = arith.addf %372, %423 : vector<8x8xf32>
    %c1_230 = arith.constant 1 : index
    %c7_231 = arith.constant 7 : index
    %425 = memref.load %arg7[%c1_230, %c7_231] : memref<4x8xf32, #tpu.memory_space<smem>>
    %426 = vector.broadcast %425 : f32 to vector<8x8xf32>
    %427 = arith.mulf %420, %426 : vector<8x8xf32>
    %428 = arith.addf %376, %427 : vector<8x8xf32>
    %c2_232 = arith.constant 2 : index
    %c7_233 = arith.constant 7 : index
    %429 = memref.load %arg7[%c2_232, %c7_233] : memref<4x8xf32, #tpu.memory_space<smem>>
    %430 = vector.broadcast %429 : f32 to vector<8x8xf32>
    %431 = arith.mulf %420, %430 : vector<8x8xf32>
    %432 = arith.addf %380, %431 : vector<8x8xf32>
    %c3_234 = arith.constant 3 : index
    %c7_235 = arith.constant 7 : index
    %433 = memref.load %arg7[%c3_234, %c7_235] : memref<4x8xf32, #tpu.memory_space<smem>>
    %434 = vector.broadcast %433 : f32 to vector<8x8xf32>
    %435 = arith.mulf %420, %434 : vector<8x8xf32>
    %436 = arith.addf %384, %435 : vector<8x8xf32>
    %c0_236 = arith.constant 0 : index
    %437 = memref.load %arg8[%c0_236] : memref<4xf32, #tpu.memory_space<smem>>
    %438 = vector.broadcast %437 : f32 to vector<8x8xf32>
    %439 = arith.addf %424, %438 : vector<8x8xf32>
    %cst_237 = arith.constant dense<0xFF800000> : vector<8xf32>
    %440 = vector.multi_reduction <maximumf>, %439, %cst_237 [1] : vector<8x8xf32> to vector<8xf32>
    %441 = vector.shape_cast %440 : vector<8xf32> to vector<8x1xf32>
    %442 = vector.broadcast %441 : vector<8x1xf32> to vector<8x8xf32>
    %443 = arith.subf %439, %442 : vector<8x8xf32>
    %444 = math.exp %443 : vector<8x8xf32>
    %cst_238 = arith.constant dense<0.000000e+00> : vector<8xf32>
    %445 = vector.multi_reduction <add>, %444, %cst_238 [1] : vector<8x8xf32> to vector<8xf32>
    %446 = vector.shape_cast %445 : vector<8xf32> to vector<8x1xf32>
    %447 = tpu.reciprocal %446 {approx = true} : vector<8x1xf32> -> vector<8x1xf32>
    %448 = arith.mulf %446, %447 : vector<8x1xf32>
    %cst_239 = arith.constant 2.000000e+00 : f32
    %449 = vector.broadcast %cst_239 : f32 to vector<8x1xf32>
    %450 = arith.subf %449, %448 : vector<8x1xf32>
    %451 = arith.mulf %447, %450 : vector<8x1xf32>
    %452 = vector.broadcast %451 : vector<8x1xf32> to vector<8x8xf32>
    %453 = arith.mulf %444, %452 : vector<8x8xf32>
    %c0_240 = arith.constant 0 : index
    %c64 = arith.constant 64 : index
    %454 = vector.load %arg10[%c0_240, %c64] : memref<8x96xf32, #tpu.memory_space<vmem>>, vector<8x8xf32>
    %cst_241 = arith.constant dense<0.000000e+00> : vector<8x8xf32>
    %455 = tpu.matmul %453, %454, %cst_241 {dimension_numbers = #tpu.dot_dimension_numbers<[1], [0], [0], [1], [0, 0, 1, 1], [], []>} : vector<8x8xf32>, vector<8x8xf32>, vector<8x8xf32> -> vector<8x8xf32>
    %c0_242 = arith.constant 0 : index
    %c0_243 = arith.constant 0 : index
    %456 = vector.load %arg11[%c0_242, %c0_243] : memref<8x32xf32, #tpu.memory_space<vmem>>, vector<8x8xf32>
    tpu.vector_store %arg11[%c0_242, %c0_243], %455 {strides = array<i32>} : memref<8x32xf32, #tpu.memory_space<vmem>>, vector<8x8xf32>,
    %c1_244 = arith.constant 1 : index
    %457 = memref.load %arg8[%c1_244] : memref<4xf32, #tpu.memory_space<smem>>
    %458 = vector.broadcast %457 : f32 to vector<8x8xf32>
    %459 = arith.addf %428, %458 : vector<8x8xf32>
    %cst_245 = arith.constant dense<0xFF800000> : vector<8xf32>
    %460 = vector.multi_reduction <maximumf>, %459, %cst_245 [1] : vector<8x8xf32> to vector<8xf32>
    %461 = vector.shape_cast %460 : vector<8xf32> to vector<8x1xf32>
    %462 = vector.broadcast %461 : vector<8x1xf32> to vector<8x8xf32>
    %463 = arith.subf %459, %462 : vector<8x8xf32>
    %464 = math.exp %463 : vector<8x8xf32>
    %cst_246 = arith.constant dense<0.000000e+00> : vector<8xf32>
    %465 = vector.multi_reduction <add>, %464, %cst_246 [1] : vector<8x8xf32> to vector<8xf32>
    %466 = vector.shape_cast %465 : vector<8xf32> to vector<8x1xf32>
    %467 = tpu.reciprocal %466 {approx = true} : vector<8x1xf32> -> vector<8x1xf32>
    %468 = arith.mulf %466, %467 : vector<8x1xf32>
    %cst_247 = arith.constant 2.000000e+00 : f32
    %469 = vector.broadcast %cst_247 : f32 to vector<8x1xf32>
    %470 = arith.subf %469, %468 : vector<8x1xf32>
    %471 = arith.mulf %467, %470 : vector<8x1xf32>
    %472 = vector.broadcast %471 : vector<8x1xf32> to vector<8x8xf32>
    %473 = arith.mulf %464, %472 : vector<8x8xf32>
    %c0_248 = arith.constant 0 : index
    %c72 = arith.constant 72 : index
    %474 = vector.load %arg10[%c0_248, %c72] : memref<8x96xf32, #tpu.memory_space<vmem>>, vector<8x8xf32>
    %cst_249 = arith.constant dense<0.000000e+00> : vector<8x8xf32>
    %475 = tpu.matmul %473, %474, %cst_249 {dimension_numbers = #tpu.dot_dimension_numbers<[1], [0], [0], [1], [0, 0, 1, 1], [], []>} : vector<8x8xf32>, vector<8x8xf32>, vector<8x8xf32> -> vector<8x8xf32>
    %c0_250 = arith.constant 0 : index
    %c8_251 = arith.constant 8 : index
    %476 = vector.load %arg11[%c0_250, %c8_251] : memref<8x32xf32, #tpu.memory_space<vmem>>, vector<8x8xf32>
    tpu.vector_store %arg11[%c0_250, %c8_251], %475 {strides = array<i32>} : memref<8x32xf32, #tpu.memory_space<vmem>>, vector<8x8xf32>,
    %c2_252 = arith.constant 2 : index
    %477 = memref.load %arg8[%c2_252] : memref<4xf32, #tpu.memory_space<smem>>
    %478 = vector.broadcast %477 : f32 to vector<8x8xf32>
    %479 = arith.addf %432, %478 : vector<8x8xf32>
    %cst_253 = arith.constant dense<0xFF800000> : vector<8xf32>
    %480 = vector.multi_reduction <maximumf>, %479, %cst_253 [1] : vector<8x8xf32> to vector<8xf32>
    %481 = vector.shape_cast %480 : vector<8xf32> to vector<8x1xf32>
    %482 = vector.broadcast %481 : vector<8x1xf32> to vector<8x8xf32>
    %483 = arith.subf %479, %482 : vector<8x8xf32>
    %484 = math.exp %483 : vector<8x8xf32>
    %cst_254 = arith.constant dense<0.000000e+00> : vector<8xf32>
    %485 = vector.multi_reduction <add>, %484, %cst_254 [1] : vector<8x8xf32> to vector<8xf32>
    %486 = vector.shape_cast %485 : vector<8xf32> to vector<8x1xf32>
    %487 = tpu.reciprocal %486 {approx = true} : vector<8x1xf32> -> vector<8x1xf32>
    %488 = arith.mulf %486, %487 : vector<8x1xf32>
    %cst_255 = arith.constant 2.000000e+00 : f32
    %489 = vector.broadcast %cst_255 : f32 to vector<8x1xf32>
    %490 = arith.subf %489, %488 : vector<8x1xf32>
    %491 = arith.mulf %487, %490 : vector<8x1xf32>
    %492 = vector.broadcast %491 : vector<8x1xf32> to vector<8x8xf32>
    %493 = arith.mulf %484, %492 : vector<8x8xf32>
    %c0_256 = arith.constant 0 : index
    %c80 = arith.constant 80 : index
    %494 = vector.load %arg10[%c0_256, %c80] : memref<8x96xf32, #tpu.memory_space<vmem>>, vector<8x8xf32>
    %cst_257 = arith.constant dense<0.000000e+00> : vector<8x8xf32>
    %495 = tpu.matmul %493, %494, %cst_257 {dimension_numbers = #tpu.dot_dimension_numbers<[1], [0], [0], [1], [0, 0, 1, 1], [], []>} : vector<8x8xf32>, vector<8x8xf32>, vector<8x8xf32> -> vector<8x8xf32>
    %c0_258 = arith.constant 0 : index
    %c16_259 = arith.constant 16 : index
    %496 = vector.load %arg11[%c0_258, %c16_259] : memref<8x32xf32, #tpu.memory_space<vmem>>, vector<8x8xf32>
    tpu.vector_store %arg11[%c0_258, %c16_259], %495 {strides = array<i32>} : memref<8x32xf32, #tpu.memory_space<vmem>>, vector<8x8xf32>,
    %c3_260 = arith.constant 3 : index
    %497 = memref.load %arg8[%c3_260] : memref<4xf32, #tpu.memory_space<smem>>
    %498 = vector.broadcast %497 : f32 to vector<8x8xf32>
    %499 = arith.addf %436, %498 : vector<8x8xf32>
    %cst_261 = arith.constant dense<0xFF800000> : vector<8xf32>
    %500 = vector.multi_reduction <maximumf>, %499, %cst_261 [1] : vector<8x8xf32> to vector<8xf32>
    %501 = vector.shape_cast %500 : vector<8xf32> to vector<8x1xf32>
    %502 = vector.broadcast %501 : vector<8x1xf32> to vector<8x8xf32>
    %503 = arith.subf %499, %502 : vector<8x8xf32>
    %504 = math.exp %503 : vector<8x8xf32>
    %cst_262 = arith.constant dense<0.000000e+00> : vector<8xf32>
    %505 = vector.multi_reduction <add>, %504, %cst_262 [1] : vector<8x8xf32> to vector<8xf32>
    %506 = vector.shape_cast %505 : vector<8xf32> to vector<8x1xf32>
    %507 = tpu.reciprocal %506 {approx = true} : vector<8x1xf32> -> vector<8x1xf32>
    %508 = arith.mulf %506, %507 : vector<8x1xf32>
    %cst_263 = arith.constant 2.000000e+00 : f32
    %509 = vector.broadcast %cst_263 : f32 to vector<8x1xf32>
    %510 = arith.subf %509, %508 : vector<8x1xf32>
    %511 = arith.mulf %507, %510 : vector<8x1xf32>
    %512 = vector.broadcast %511 : vector<8x1xf32> to vector<8x8xf32>
    %513 = arith.mulf %504, %512 : vector<8x8xf32>
    %c0_264 = arith.constant 0 : index
    %c88 = arith.constant 88 : index
    %514 = vector.load %arg10[%c0_264, %c88] : memref<8x96xf32, #tpu.memory_space<vmem>>, vector<8x8xf32>
    %cst_265 = arith.constant dense<0.000000e+00> : vector<8x8xf32>
    %515 = tpu.matmul %513, %514, %cst_265 {dimension_numbers = #tpu.dot_dimension_numbers<[1], [0], [0], [1], [0, 0, 1, 1], [], []>} : vector<8x8xf32>, vector<8x8xf32>, vector<8x8xf32> -> vector<8x8xf32>
    %c0_266 = arith.constant 0 : index
    %c24_267 = arith.constant 24 : index
    %516 = vector.load %arg11[%c0_266, %c24_267] : memref<8x32xf32, #tpu.memory_space<vmem>>, vector<8x8xf32>
    tpu.vector_store %arg11[%c0_266, %c24_267], %515 {strides = array<i32>} : memref<8x32xf32, #tpu.memory_space<vmem>>, vector<8x8xf32>,
    %c0_268 = arith.constant 0 : index
    %c0_269 = arith.constant 0 : index
    %517 = vector.load %arg11[%c0_268, %c0_269] : memref<8x32xf32, #tpu.memory_space<vmem>>, vector<8x32xf32>
    %c0_270 = arith.constant 0 : index
    %c0_271 = arith.constant 0 : index
    %518 = vector.load %arg4[%c0_270, %c0_271] : memref<32x32xf32, #tpu.memory_space<vmem>>, vector<32x32xf32>
    %cst_272 = arith.constant dense<0.000000e+00> : vector<8x32xf32>
    %519 = tpu.matmul %517, %518, %cst_272 {dimension_numbers = #tpu.dot_dimension_numbers<[1], [0], [0], [1], [0, 0, 1, 1], [], []>} : vector<8x32xf32>, vector<32x32xf32>, vector<8x32xf32> -> vector<8x32xf32>
    %c0_273 = arith.constant 0 : index
    %c0_274 = arith.constant 0 : index
    %c0_275 = arith.constant 0 : index
    %520 = vector.load %arg9[%c0_273, %c0_274, %c0_275] : memref<1x8x32xf32, #tpu.memory_space<vmem>>, vector<1x8x32xf32>
    %521 = vector.shape_cast %520 : vector<1x8x32xf32> to vector<8x32xf32>
    %522 = vector.shape_cast %519 : vector<8x32xf32> to vector<1x8x32xf32>
    tpu.vector_store %arg9[%c0_273, %c0_274, %c0_275], %522 {strides = array<i32>} : memref<1x8x32xf32, #tpu.memory_space<vmem>>, vector<1x8x32xf32>,
    return
  }
  func.func @transform_0(%arg0: i32) -> (i32, i32, i32) {
    %c0_i32 = arith.constant 0 : i32
    %c0_i32_0 = arith.constant 0 : i32
    %c0_i32_1 = arith.constant 0 : i32
    return %arg0, %c0_i32, %c0_i32_0 : i32, i32, i32
  }
  func.func @transform_1(%arg0: i32) -> (i32, i32, i32, i32) {
    %c0_i32 = arith.constant 0 : i32
    %c0_i32_0 = arith.constant 0 : i32
    %c0_i32_1 = arith.constant 0 : i32
    %c0_i32_2 = arith.constant 0 : i32
    return %c0_i32, %arg0, %c0_i32_0, %c0_i32_1 : i32, i32, i32, i32
  }
  func.func @transform_2(%arg0: i32) -> (i32, i32) {
    %c0_i32 = arith.constant 0 : i32
    %c0_i32_0 = arith.constant 0 : i32
    %c0_i32_1 = arith.constant 0 : i32
    return %c0_i32, %c0_i32_0 : i32, i32
  }
  func.func @transform_3(%arg0: i32) -> (i32, i32) {
    %c0_i32 = arith.constant 0 : i32
    %c0_i32_0 = arith.constant 0 : i32
    %c0_i32_1 = arith.constant 0 : i32
    return %c0_i32, %c0_i32_0 : i32, i32
  }
  func.func @transform_4(%arg0: i32) -> (i32, i32) {
    %c0_i32 = arith.constant 0 : i32
    %c0_i32_0 = arith.constant 0 : i32
    %c0_i32_1 = arith.constant 0 : i32
    return %c0_i32, %c0_i32_0 : i32, i32
  }
  func.func @transform_5(%arg0: i32) -> i32 {
    %c0_i32 = arith.constant 0 : i32
    %c0_i32_0 = arith.constant 0 : i32
    return %c0_i32 : i32
  }
  func.func @transform_6(%arg0: i32) -> (i32, i32) {
    %c0_i32 = arith.constant 0 : i32
    %c0_i32_0 = arith.constant 0 : i32
    %c0_i32_1 = arith.constant 0 : i32
    return %c0_i32, %c0_i32_0 : i32, i32
  }
  func.func @transform_7(%arg0: i32) -> i32 {
    %c0_i32 = arith.constant 0 : i32
    %c0_i32_0 = arith.constant 0 : i32
    return %c0_i32 : i32
  }
  func.func @transform_8(%arg0: i32) -> (i32, i32, i32) {
    %c0_i32 = arith.constant 0 : i32
    %c0_i32_0 = arith.constant 0 : i32
    %c0_i32_1 = arith.constant 0 : i32
    return %arg0, %c0_i32, %c0_i32_0 : i32, i32, i32
  }
}

</mosaic_0001>

<bundles_post_ra>
// kernel: tpu_custom_call.1
= control target key start
LH: loop header
LB: loop body
LE: loop exit
PB: predicated region body
PF: predicated region fallthrough
CT: control target
= control target key end

     0   :  { %s3641_s0 = inlined_call_operand.hbm [shape: f32[2,8,32], index: 0, kind: input, shape index: {}]   ;;  %s3642_s1 = inlined_call_operand.hbm [shape: f32[4,2,8,8], index: 1, kind: input, shape index: {}]   ;;  %s3643_s2 = inlined_call_operand.hbm [shape: f32[32,96], index: 2, kind: input, shape index: {}]   ;;  %s3644_s3 = inlined_call_operand.hbm [shape: f32[32,32], index: 3, kind: input, shape index: {}]   ;;  %s3645_s4 = inlined_call_operand.vmem [shape: f32[8,8], index: 4, kind: input, shape index: {}]   ;;  %s3646_s5 = inlined_call_operand.vmem [shape: f32[8], index: 5, kind: input, shape index: {}]   ;;  %s3647_s6 = inlined_call_operand.vmem [shape: f32[4,8], index: 6, kind: input, shape index: {}]   ;;  %s3648_s7 = inlined_call_operand.vmem [shape: f32[4], index: 7, kind: input, shape index: {}]   ;;  %s3649_s8 = inlined_call_operand.hbm [shape: f32[2,8,32], index: 8, kind: output, shape index: {}]  }
   0x1   :  { %3723 = sst [smem:[#allocation86_spill]] %s3641_s0 }
   0x2   :  { %3724 = sst [smem:[#allocation87_spill]] %s3642_s1 }
   0x3   :  { %3725 = sst [smem:[#allocation88_spill]] %s3643_s2 }
   0x4   :  { %3726 = sst [smem:[#allocation89_spill]] %s3644_s3 }
   0x5   :  { %3727 = sst [smem:[#allocation90_spill]] %s3645_s4 }
   0x6   :  { %3728 = sst [smem:[#allocation91_spill]] %s3646_s5 }
   0x7   :  { %3729 = sst [smem:[#allocation92_spill]] %s3647_s6 }
   0x8   :  { %3730 = sst [smem:[#allocation93_spill]] %s3648_s7 }
   0x9   :  { %3731 = sst [smem:[#allocation94_spill]] %s3649_s8 }
   0xa   :  { %13 = vsyncpa [#allocation5], 0 }
   0xb   :  { %15 = vsyncpa [#allocation5 + $0x1], 0 }
   0xc   :  { %16 = vsyncpa [#allocation9], 0 }
   0xd   :  { %18 = vsyncpa [#allocation9 + $0x1], 0 }
   0xe   :  { %19 = vsyncpa [#allocation12], 0 }
   0xf   :  { %20 = vsyncpa [#allocation7], 0 }
  0x10   :  { %21 = vsyncpa [#allocation15], 0 }
  0x11   :  { %22 = vsyncpa [#allocation18], 0 }
  0x12   :  { %23 = vsyncpa [#allocation6], 0 }
  0x13   :  { %25 = vsyncpa [#allocation6 + $0x1], 0  ;;  %s2627_s27 = smov 0   ;;  %s2629_s28 = smov 0  }
  0x14   :  { %s2631_s29 = smov 0   ;;  %s2633_s30 = smov 0  }
  0x15 LB: > { %3732 = sst [smem:[#allocation28_spill]] %s2539_s27  ;;  %s2553_s9 = smov [#allocation10]   ;;  %s2551_s30 = sphi %s2633_s30, %s3959_s30   ;;  %s2547_s29 = sphi %s2631_s29, %s3962_s29   ;;  %s2543_s28 = sphi %s2629_s28, %s3961_s28   ;;  %s2539_s27 = sphi %s2627_s27, %s3960_s27  }
  0x16   : > { %3733 = sst [smem:[#allocation29_spill]] %s2543_s28  ;;  %s252_s10 = sshll.u32 %s2553_s9, 4  ;;  %s2653_s10 = int_to_ptr.vmem [resolvable:$true] %s252_s10 }
  0x17   : > { %3734 = sst [smem:[#allocation30_spill]] %s2547_s29  ;;  %s2648_s11 = sadd.s32 4294967295, %s2551_s30  }
  0x18   : > { %3735 = sst [smem:[#allocation31_spill]] %s2551_s30  ;;  %p1890_p0 = scmp.ge.s32.totalorder %s2551_s30, 1 }
  0x19   : > { %3736 = sst [smem:[#allocation32_spill]] %s2648_s11  ;;  %p3650_p1 = scmp.eq.s32.totalorder %s2648_s11, 0 }
  0x1a   : > { %p240_p2 = scmp.lt.s32.totalorder %s2551_s30, 3  ;;  %s3738_s5 = sld [smem:[#allocation91_spill]] }
  0x1b   : > { %s2554_s17 = smov [#allocation11]   ;;  %s3740_s4 = sld [smem:[#allocation90_spill]] }
  0x1c   : > { %p2655_p3 = pnand %p1890_p0, %p240_p2  ;;  %s265_s18 = sshll.u32 %s2554_s17, 4  ;;  %s2676_s18 = int_to_ptr.vmem [resolvable:$true] %s265_s18 }
  0x1d   : > { %s3741_s2 = sld [smem:[#allocation88_spill]] }
  0x1e   : > { %s3737_s12 = scalar_select %p2655_p3, 1, 0 }
  0x1f   : > { %p2167_p5 = pneg %p2655_p3 }
  0x20   : > { %s290_s15 = sshll.u32 %s3738_s5, 4  ;;  %s2665_s15 = int_to_ptr.vmem [resolvable:$true] %s290_s15 }
  0x21   : > { %p2669_p6 = pnand %p2167_p5, %p3650_p1  ;;  %s279_s21 = sshll.u32 %s3740_s4, 4  ;;  %s280_s21 = int_to_ptr.vmem [resolvable:$true] %s279_s21 }
  0x23   : > { %s2285_s24 = scalar_lea.hbm %s3741_s2, 512  ;;  %p2686_p8 = pneg %p2669_p6 }
  0x24   : > { %p2286_p7 = scmp.ne.s32.totalorder %s3741_s2, %s2285_s24  ;;  %p2292_p11 = scmp.lt.u32.totalorder %s2285_s24, %s3741_s2 }
  0x26   : > { %p2288_p9 = pnand %p2686_p8, %p2286_p7 }
  0x28   : > { %p2289_p10 = pneg %p2288_p9 }
  0x2a   : > { %p2294_p12 = pnand %p2292_p11, %p2289_p10 }
  0x2c   : > { %2297 = shalt.err (!%p2294_p12)
}
  0x2d   : > { %s2298_s17 = scalar_lea.vmem %s2653_s10, 512  ;;  %p2306_p5 = scmp.lt.s32.totalorder %s2653_s10, %s2653_s10 }
  0x2e   : > { %p2299_p13 = scmp.ne.s32.totalorder %s2653_s10, %s2298_s17  ;;  %p2307_p4 = scmp.lt.s32.totalorder %s2298_s17, %s2298_s17 }
  0x30   : > { %p2301_p0 = pnand %p2299_p13, %p2686_p8  ;;  %p2308_p7 = por %p2307_p4, %p2306_p5 }
  0x32   : > { %p2302_p2 = pneg %p2301_p0 }
  0x34   : > { %p2309_p9 = pnand %p2308_p7, %p2302_p2 }
  0x36   : > { %2312 = shalt.err (!%p2309_p9)
}
  0x37   : > { %s3652_s19 = smov 128   ;;  %s3653_s20 = smov 8  }
  0x38   : > { %2170 = dma.hbm_to_vmem [thread:$0]  (!%p2669_p6), %s3741_s2, 512, %s2653_s10, [#allocation9], %s3652_s19, %s3652_s19, %s3653_s20  }
  0x39   : > { %s2313_s24 = scalar_lea.vmem %s2665_s15, 16  ;;  %p2321_p12 = scmp.lt.s32.totalorder %s2665_s15, %s2665_s15 }
  0x3a   : > { %p2314_p4 = scmp.ne.s32.totalorder %s2665_s15, %s2313_s24  ;;  %p2322_p13 = scmp.lt.s32.totalorder %s2313_s24, %s2313_s24 }
  0x3c   : > { %p2316_p10 = pnand %p2314_p4, %p2686_p8  ;;  %p2323_p0 = por %p2322_p13, %p2321_p12 }
  0x3e   : > { %p2317_p11 = pneg %p2316_p10 }
  0x40   : > { %p2324_p2 = pnand %p2323_p0, %p2317_p11 }
  0x42   : > { %2327 = shalt.err (!%p2324_p2)
}
  0x43   : > { %s2557_s25 = smov [#allocation14]   ;;  %s3743_s3 = sld [smem:[#allocation89_spill]] }
  0x44   : > { %2179 = dma.vmem_to_smem (!%p2669_p6), %s2665_s15, 16, %s2557_s25, [#allocation15]  }
  0x49   : > { %s2328_s10 = scalar_lea.hbm %s3743_s3, 512 }
  0x4a   : > { %p2329_p5 = scmp.ne.s32.totalorder %s3743_s3, %s2328_s10  ;;  %p2335_p4 = scmp.lt.u32.totalorder %s2328_s10, %s3743_s3 }
  0x4c   : > { %p2331_p7 = pnand %p2329_p5, %p2686_p8 }
  0x4e   : > { %p2332_p9 = pneg %p2331_p7 }
  0x50   : > { %p2337_p10 = pnand %p2335_p4, %p2332_p9 }
  0x52   : > { %2340 = shalt.err (!%p2337_p10)
}
  0x53   : > { %s2341_s15 = scalar_lea.vmem %s2676_s18, 512  ;;  %p2349_p0 = scmp.lt.s32.totalorder %s2676_s18, %s2676_s18 }
  0x54   : > { %p2342_p11 = scmp.ne.s32.totalorder %s2676_s18, %s2341_s15  ;;  %p2350_p2 = scmp.lt.s32.totalorder %s2341_s15, %s2341_s15 }
  0x56   : > { %p2344_p12 = pnand %p2342_p11, %p2686_p8  ;;  %p2351_p5 = por %p2350_p2, %p2349_p0 }
  0x58   : > { %p2345_p13 = pneg %p2344_p12 }
  0x5a   : > { %p2352_p7 = pnand %p2351_p5, %p2345_p13 }
  0x5c   : > { %2355 = shalt.err (!%p2352_p7)
}
  0x5d   : > { %2173 = dma.hbm_to_vmem [thread:$0]  (!%p2669_p6), %s3743_s3, 512, %s2676_s18, [#allocation12], %s3652_s19, %s3652_s19, %s3653_s20  }
  0x5e   : > { %s2356_s10 = scalar_lea.vmem %s280_s21, 128  ;;  %p2364_p11 = scmp.lt.s32.totalorder %s280_s21, %s280_s21 }
  0x5f   : > { %p2357_p9 = scmp.ne.s32.totalorder %s280_s21, %s2356_s10  ;;  %p2365_p12 = scmp.lt.s32.totalorder %s2356_s10, %s2356_s10 }
  0x61   : > { %p2359_p4 = pnand %p2357_p9, %p2686_p8  ;;  %p2366_p13 = por %p2365_p12, %p2364_p11 }
  0x63   : > { %p2360_p10 = pneg %p2359_p4 }
  0x65   : > { %p2367_p0 = pnand %p2366_p13, %p2360_p10 }
  0x67   : > { %2370 = shalt.err (!%p2367_p0)
}
  0x68   : > { %s2558_s14 = smov [#allocation13]   ;;  %s3744_s6 = sld [smem:[#allocation92_spill]] }
  0x69   : > { %2176 = dma.vmem_to_smem (!%p2669_p6), %s280_s21, 128, %s2558_s14, [#allocation7]  }
  0x6a   : > { %s3745_s7 = sld [smem:[#allocation93_spill]] }
  0x6e   : > { %s301_s22 = sshll.u32 %s3744_s6, 4  ;;  %s302_s22 = int_to_ptr.vmem [resolvable:$true] %s301_s22 }
  0x6f   : > { %s2371_s25 = scalar_lea.vmem %s302_s22, 64  ;;  %p2379_p9 = scmp.lt.s32.totalorder %s302_s22, %s302_s22 }
  0x70   : > { %s312_s24 = sshll.u32 %s3745_s7, 4  ;;  %p2372_p2 = scmp.ne.s32.totalorder %s302_s22, %s2371_s25  ;;  %s313_s24 = int_to_ptr.vmem [resolvable:$true] %s312_s24 }
  0x71   : > { %p2380_p4 = scmp.lt.s32.totalorder %s2371_s25, %s2371_s25 }
  0x72   : > { %p2374_p5 = pnand %p2372_p2, %p2686_p8 }
  0x73   : > { %p2381_p10 = por %p2380_p4, %p2379_p9 }
  0x74   : > { %p2375_p7 = pneg %p2374_p5 }
  0x76   : > { %p2382_p11 = pnand %p2381_p10, %p2375_p7 }
  0x78   : > { %2385 = shalt.err (!%p2382_p11)
}
  0x79   : > { %s2559_s21 = smov [#allocation16]   ;;  %s2386_s26 = scalar_lea.vmem %s313_s24, 16 }
  0x7a   : > { %2182 = dma.vmem_to_smem (!%p2669_p6), %s302_s22, 64, %s2559_s21, [#allocation15]  }
  0x7b   : > { %p2387_p12 = scmp.ne.s32.totalorder %s313_s24, %s2386_s26  ;;  %p2394_p1 = scmp.lt.s32.totalorder %s313_s24, %s313_s24 }
  0x7c   : > { %p2395_p3 = scmp.lt.s32.totalorder %s2386_s26, %s2386_s26 }
  0x7d   : > { %p2389_p13 = pnand %p2387_p12, %p2686_p8 }
  0x7e   : > { %p2396_p2 = por %p2395_p3, %p2394_p1 }
  0x7f   : > { %p2390_p0 = pneg %p2389_p13 }
  0x81   : > { %p2397_p5 = pnand %p2396_p2, %p2390_p0 }
  0x83   : > { %2400 = shalt.err (!%p2397_p5)
}
  0x84   : > { %s2560_s13 = smov [#allocation17]   ;;  %s1889_s9 = sadd.s32 4294967294, %s2551_s30  }
  0x85   : > { %2185 = dma.vmem_to_smem (!%p2669_p6), %s313_s24, 16, %s2560_s13, [#allocation18]  }
  0x86   : > { %s2769_s10 = sadd.s32 1, %s2551_s30   ;;  %s38_s14 = sadd.s32 1, %s2547_s29 }
  0x87   : > { %3746 = sst [smem:[#allocation33_spill]] %s2769_s10  ;;  %s35_s16 = ssub.s32 %s2551_s30, %s2769_s10 }
  0x88   : > { %p36_p1 = scmp.eq.s32.totalorder %s35_s16, 0  ;;  %p45_p3 = scmp.ne.s32.totalorder %s2547_s29, %s2543_s28 }
  0x89   : > { %p46_p8 = scmp.eq.s32.totalorder %s2551_s30, 0  ;;  %p51_p7 = scmp.ne.s32.totalorder %s2543_s28, %s2539_s27 }
  0x8a   : > { %s2780_s18 = scalar_select %p36_p1, %s2547_s29, %s38_s14  }
  0x8b   : > { %p2782_p9 = por %p46_p8, %p45_p3  ;;  %p3749_p4 = scmp.eq.s32.totalorder %s2648_s11, 0 }
  0x8c   : > { %3747 = sst [smem:[#allocation34_spill]] %s2780_s18  ;;  %p227_p10 = scmp.eq.s32.totalorder %s2648_s11, 1 }
  0x8d   : > { %p2788_p6 = por %p3749_p4, %p51_p7  ;;  %p233_p11 = scmp.eq.s32.totalorder %s1889_s9, 1 }
  0x8e   : > { %p2203_p12 = scmp.lt.s32.totalorder %s2551_s30, 2  ;;  %s2795_s23 = sand.u32 1, %s2547_s29  }
  0x8f   : > { %p2797_p13 = por %p227_p10, %p45_p3  ;;  %p2801_p0 = por %p233_p11, %p51_p7 }
  0x90   : > { %s1898_s25 = sshll.u32 %s2795_s23, 3  ;;  %s1899_s21 = sshll.u32 %s2551_s30, 7 }
  0x91   : > { %s3751_s15 = scalar_select %p2797_p13, 1, 0 }
  0x92   : > { %s3753_s24 = scalar_select %p2801_p0, 1, 0 }
  0x93   : > { %3752 = sst [smem:[#allocation35_spill]] %s3751_s15  ;;  %s327_s16 = scalar_lea.vmem [#allocation4], %s1898_s25 }
  0x94   : > { %3754 = sst [smem:[#allocation36_spill]] %s3753_s24  ;;  %s3755_s0 = sld [smem:[#allocation86_spill]] }
  0x95   : > { %s334_s14 = sshll.u32 %s327_s16, 4  ;;  %p2816_p2 = pnand %p2203_p12, %p2782_p9  ;;  %s2812_s14 = int_to_ptr.vmem [resolvable:$true] %s334_s14 }
  0x96   : > { %s3757_s1 = sld [smem:[#allocation87_spill]]  ;;  %s324_s3 = scalar_lea.sflag [#allocation5], %s2795_s23 }
  0x97   : > { %p2403_p1 = pneg %p2816_p2 }
  0x9a   : > { %s2810_s9 = scalar_lea.hbm %s3755_s0, %s1899_s21  ;;  %s2406_s16 = scalar_lea.hbm %s3755_s0, 256 }
  0x9b   : > { %s2401_s4 = scalar_lea.hbm %s2810_s9, 128  ;;  %p2407_p7 = scmp.lt.u32.totalorder %s2810_s9, %s3755_s0 }
  0x9c   : > { %s2824_s13 = scalar_lea.hbm %s3757_s1, %s1899_s21  ;;  %p2402_p5 = scmp.ne.s32.totalorder %s2810_s9, %s2401_s4 }
  0x9d   : > { %p2408_p9 = scmp.lt.u32.totalorder %s2406_s16, %s2401_s4  ;;  %p2410_p10 = scmp.lt.u32.totalorder %s2401_s4, %s2810_s9 }
  0x9e   : > { %p2404_p3 = pnand %p2403_p1, %p2402_p5 }
  0x9f   : > { %p2409_p4 = por %p2408_p9, %p2407_p7 }
  0xa0   : > { %p2405_p8 = pneg %p2404_p3 }
  0xa1   : > { %p2411_p11 = por %p2410_p10, %p2409_p4 }
  0xa3   : > { %p2412_p12 = pnand %p2411_p11, %p2405_p8 }
  0xa5   : > { %2415 = shalt.err (!%p2412_p12)
}
  0xa6   : > { %s2416_s2 = scalar_lea.vmem %s2812_s14, 128  ;;  %s2561_s21 = smov [#allocation4]  }
  0xa7   : > { %p2417_p5 = scmp.ne.s32.totalorder %s2812_s14, %s2416_s2  ;;  %s2421_s26 = sshll.u32 %s2561_s21, 4  ;;  %s2422_s26 = int_to_ptr.vmem [resolvable:$false] %s2421_s26 }
  0xa8   : > { %s2423_s5 = scalar_lea.vmem %s2422_s26, 256  ;;  %p2424_p13 = scmp.lt.s32.totalorder %s2812_s14, %s2422_s26 }
  0xa9   : > { %p2419_p3 = pnand %p2417_p5, %p2403_p1  ;;  %p2425_p7 = scmp.lt.s32.totalorder %s2423_s5, %s2416_s2 }
  0xab   : > { %p2420_p0 = pneg %p2419_p3  ;;  %p2426_p9 = por %p2425_p7, %p2424_p13 }
  0xad   : > { %p2427_p4 = pnand %p2426_p9, %p2420_p0 }
  0xaf   : > { %2430 = shalt.err (!%p2427_p4)
}
  0xb0   : > { %2189 = dma.hbm_to_vmem [thread:$0]  (!%p2816_p2), %s2810_s9, 128, %s2812_s14, %s324_s3  }
  0xb1   : > { %s3758_s4 = sshll.u32 %s2795_s23, 5  ;;  %s341_s25 = sand.u32 1, %s2551_s30  }
  0xb2   : > { %s345_s20 = scalar_lea.vmem [#allocation8], %s3758_s4  ;;  %s2857_s16 = scalar_lea.sflag [#allocation9], %s341_s25 }
  0xb3   : > { %s351_s17 = sshll.u32 %s345_s20, 4  ;;  %s2431_s2 = scalar_lea.hbm %s2824_s13, 512  ;;  %s2855_s17 = int_to_ptr.vmem [resolvable:$true] %s351_s17 }
  0xb4   : > { %p2432_p13 = scmp.ne.s32.totalorder %s2824_s13, %s2431_s2  ;;  %s2436_s5 = scalar_lea.hbm %s3757_s1, 1024 }
  0xb5   : > { %p2437_p10 = scmp.lt.u32.totalorder %s2824_s13, %s3757_s1  ;;  %p2438_p11 = scmp.lt.u32.totalorder %s2436_s5, %s2431_s2 }
  0xb6   : > { %p2434_p0 = pnand %p2432_p13, %p2403_p1  ;;  %p2440_p5 = scmp.lt.u32.totalorder %s2431_s2, %s2824_s13 }
  0xb7   : > { %p2439_p12 = por %p2438_p11, %p2437_p10 }
  0xb8   : > { %p2435_p8 = pneg %p2434_p0 }
  0xb9   : > { %p2441_p3 = por %p2440_p5, %p2439_p12 }
  0xbb   : > { %p2442_p7 = pnand %p2441_p3, %p2435_p8 }
  0xbd   : > { %2445 = shalt.err (!%p2442_p7)
}
  0xbe   : > { %s2446_s23 = scalar_lea.vmem %s2855_s17, 512  ;;  %s2562_s9 = smov [#allocation8]  }
  0xbf   : > { %p2447_p9 = scmp.ne.s32.totalorder %s2855_s17, %s2446_s23  ;;  %s2451_s14 = sshll.u32 %s2562_s9, 4  ;;  %s2452_s14 = int_to_ptr.vmem [resolvable:$false] %s2451_s14 }
  0xc0   : > { %s2453_s0 = scalar_lea.vmem %s2452_s14, 1024  ;;  %p2454_p0 = scmp.lt.s32.totalorder %s2855_s17, %s2452_s14 }
  0xc1   : > { %p2449_p4 = pnand %p2447_p9, %p2403_p1  ;;  %p2455_p10 = scmp.lt.s32.totalorder %s2453_s0, %s2446_s23 }
  0xc3   : > { %p2450_p13 = pneg %p2449_p4  ;;  %p2456_p11 = por %p2455_p10, %p2454_p0 }
  0xc5   : > { %p2457_p12 = pnand %p2456_p11, %p2450_p13 }
  0xc7   : > { %2460 = shalt.err (!%p2457_p12)
}
  0xc8   : > { %s2563_s4 = smov 256   ;;  %s3759_s20 = smov 8  }
  0xc9   : > { %s3760_s25 = smov 128   ;;  %p3761_p1 = scmp.ne.s32.totalorder %s3737_s12, 0 }
  0xca   : > { %2192 = dma.hbm_to_vmem [thread:$0]  (!%p2816_p2), %s2824_s13, 512, %s2855_s17, %s2857_s16, %s2563_s4, %s3760_s25, %s3759_s20  }
  0xcb   : > { %363 = sbr.rel (%p3761_p1) target bundleno = 1787 (0x6fb), region = 52 }
  0xd2   : > { %s2888_s2 = sand.u32 1, %s2543_s28  }
  0xd3   : > { %3762 = sst [smem:[#allocation37_spill]] %s2888_s2  ;;  %s3655_s21 = sshll.u32 %s2888_s2, 3 }
  0xd4   : > { %s366_s26 = scalar_lea.sflag [#allocation5], %s2888_s2  ;;  %s2894_s19 = scalar_lea.vmem [#allocation4], %s3655_s21 }
  0xd5   : > { %2506 = dma.done.wait (%p2788_p6), %s366_s26, 128  }
  0xd6   : > { %2508 = vsyncadd (%p2788_p6), %s366_s26, 4294967168  ;;  %s374_s12 = sand.u32 1, %s2648_s11   ;;  %s1904_s13 = sshll.u32 %s2888_s2, 5 }
  0xd7   : > { %s375_s17 = scalar_lea.sflag [#allocation9], %s374_s12  ;;  %s2902_s16 = scalar_lea.vmem [#allocation8], %s1904_s13 }
  0xd8   : > { %3763 = sst [smem:[#allocation38_spill]] %s2902_s16 }
  0xd9   : > { %2510 = dma.done.wait (%p2788_p6), %s375_s17, 512  }
  0xda   : > { %2512 = vsyncadd (%p2788_p6), %s375_s17, 4294966784  ;;  %p3764_p2 = scmp.eq.s32.totalorder %s2648_s11, 0 }
  0xdc   : > { %2514 = dma.done.wait (%p3764_p2), [#allocation9], 512   ;;  %p3765_p8 = pmov %p3764_p2 }
  0xdd   : > { %p3766_p5 = pmov %p3764_p2 }
  0xde   : > { %2516 = vsyncadd (%p3765_p8), [#allocation9], 4294966784 }
  0xdf   : > { %2518 = dma.done.wait (%p3766_p5), [#allocation12], 512   ;;  %p3767_p3 = pmov %p3764_p2 }
  0xe0   : > { %p3768_p7 = pmov %p3764_p2 }
  0xe1   : > { %2520 = vsyncadd (%p3767_p3), [#allocation12], 4294966784 }
  0xe2   : > { %2522 = dma.done.wait (%p3768_p7), [#allocation7], 128   ;;  %p3769_p9 = pmov %p3764_p2 }
  0xe3   : > { %p3770_p6 = pmov %p3764_p2 }
  0xe4   : > { %2524 = vsyncadd (%p3769_p9), [#allocation7], 4294967168 }
  0xe5   : > { %2526 = dma.done.wait (%p3770_p6), [#allocation15], 80   ;;  %p3771_p4 = pmov %p3764_p2 }
  0xe6   : > { %p3772_p13 = pmov %p3764_p2 }
  0xe7   : > { %2528 = vsyncadd (%p3771_p4), [#allocation15], 4294967216 }
  0xe8   : > { %2530 = dma.done.wait (%p3772_p13), [#allocation18], 16   ;;  %p3773_p0 = pmov %p3764_p2 }
  0xea   : > { %2532 = vsyncadd (%p3773_p0), [#allocation18], 4294967280 }
  0xeb   : > { %407 = sfence }
  0xec   : > { %v442_v0 = vld [vmem:[#allocation10] sm:$0xff]  ;;  %v443_v1 = vld [vmem:[#allocation10 + $0x8] sm:$0xff]  ;;  %v444_v2 = vld [vmem:[#allocation10 + $0x10] sm:$0xff]  ;;  %v3706_v3 = vmov 0.0|0.0   ;;  %vm2565_vm0 = vmmov 0   ;;  %v3708_v6 = vmov 0.0  }
  0xed   : > { %2125 = vmatprep.subr.bf16.mxu0 %v3706_v3  ;;  %v2126_v4 = vpack.c.bf16 %v443_v1, %v442_v0  ;;  %v445_v5 = vld [vmem:[#allocation10 + $0x18] sm:$0xff]  ;;  %2071 = vmatprep.mubr.msk.f32.mxu0 %vm2565_vm0, %v3708_v6  ;;  %vm446_vm1 = vcmask 261120   ;;  %vm520_vm2 = vcmask 785408   ;;  %s2567_s22 = smov 120   ;;  %s2568_s5 = smov 96   ;;  %vm526_vm3 = vcmask 64512  }
  0xee   : > { %2074 = vmatprep.subr.mxu1 %v3708_v6  ;;  %2076 = vmatprep.mubr.msk.f32.mxu1 %vm2565_vm0, %v3708_v6  ;;  %v2129_v7 = vpack.c.bf16 %v445_v5, %v444_v2  ;;  %v441_v8 = vld [vmem:[%s2894_s19] sm:$0xff]  ;;  %s2569_s3 = smov 80   ;;  %s2570_s23 = smov 88   ;;  %vm1439_vm4 = vcmask 130112   ;;  %vm1540_vm5 = vcmask 195712   ;;  %vm1641_vm6 = vcmask 261312  }
  0xef   : > { %2127 = vmatpush3.bf16.msra.mxu0 %v2126_v4  ;;  %s2571_s9 = smov 72   ;;  %s2572_s14 = smov 112  }
  0xf0   : > { %2128 = vmatprep.subr.bf16.mxu0 %v3706_v3  ;;  %s2573_s0 = smov 104   ;;  %s2970_s4 = sld [smem:[#allocation13]] }
  0xf1   : > { %s2972_s20 = sld [smem:[#allocation13 + $0x80]]  ;;  %s3000_s21 = sld [smem:[#allocation13 + $0x381]] }
  0xf2   : > { %s2974_s25 = sld [smem:[#allocation13 + $0x100]]  ;;  %s3002_s1 = sld [smem:[#allocation13 + $0x2]] }
  0xf3   : > { %2130 = vmatpush3.bf16.msra.mxu0 %v2129_v7  ;;  %s2976_s26 = sld [smem:[#allocation13 + $0x180]]  ;;  %s3004_s6 = sld [smem:[#allocation13 + $0x82]] }
  0xf4   : > { %2094 = vmatprep.subr.mxu0 %v3708_v6  ;;  %s2978_s19 = sld [smem:[#allocation13 + $0x200]]  ;;  %s3006_s7 = sld [smem:[#allocation13 + $0x102]] }
  0xf5   : > { %s2980_s12 = sld [smem:[#allocation13 + $0x280]]  ;;  %s3008_s18 = sld [smem:[#allocation13 + $0x182]] }
  0xf6   : > { %2072 = vmatmul.mubr.msk.f32.vlgmr.msra.gmra.mrb[0].mxu0 %vm446_vm1, %v441_v8  ;;  %3775 = sst [smem:[#allocation40_spill]] %s2970_s4  ;;  %s2982_s13 = sld [smem:[#allocation13 + $0x300]]  ;;  %v843_v19 = vstv %s2970_s4 }
  0xf7   : > { %2096 = vmatprep.mubr.msk.f32.mxu0 %vm2565_vm0, %v3708_v6  ;;  %3776 = sst [smem:[#allocation41_spill]] %s2972_s20  ;;  %s2984_s17 = sld [smem:[#allocation13 + $0x380]]  ;;  %v890_v20 = vstv %s2972_s20  ;;  %v1199_v34 = vstv %s3000_s21 }
  0xf8   : > { %3777 = sst [smem:[#allocation42_spill]] %s2974_s25  ;;  %s3010_s29 = sld [smem:[#allocation13 + $0x202]]  ;;  %v941_v21 = vstv %s2974_s25  ;;  %v850_v35 = vstv %s3002_s1 }
  0xf9   : > { %3778 = sst [smem:[#allocation43_spill]] %s2976_s26  ;;  %s3012_s28 = sld [smem:[#allocation13 + $0x282]]  ;;  %v992_v22 = vstv %s2976_s26 }
  0xfa   : > { %3779 = sst [smem:[#allocation44_spill]] %s2978_s19  ;;  %s3014_s10 = sld [smem:[#allocation13 + $0x302]]  ;;  %v1043_v23 = vstv %s2978_s19 }
  0xfb   : > { %3780 = sst [smem:[#allocation45_spill]] %s2980_s12  ;;  %s3016_s30 = sld [smem:[#allocation13 + $0x382]]  ;;  %v1094_v24 = vstv %s2980_s12 }
  0xfc   : > { %3781 = sst [smem:[#allocation46_spill]] %s2982_s13  ;;  %s3018_s24 = sld [smem:[#allocation13 + $0x3]]  ;;  %v1145_v25 = vstv %s2982_s13 }
  0xfd   : > { %3782 = sst [smem:[#allocation47_spill]] %s2984_s17  ;;  %s3020_s27 = sld [smem:[#allocation13 + $0x83]]  ;;  %v1196_v26 = vstv %s2984_s17 }
  0xfe   : > { %3790 = sst [smem:[#allocation55_spill]] %s3000_s21  ;;  %s3022_s8 = sld [smem:[#allocation13 + $0x103]] }
  0xff   : > { %3791 = sst [smem:[#allocation56_spill]] %s3002_s1  ;;  %s3026_s2 = sld [smem:[#allocation13 + $0x4]] }
 0x100   : > { %3792 = sst [smem:[#allocation57_spill]] %s3004_s6  ;;  %s3024_s15 = sld [smem:[#allocation13 + $0x183]] }
 0x101   : > { %3793 = sst [smem:[#allocation58_spill]] %s3006_s7  ;;  %s3028_s11 = sld [smem:[#allocation13 + $0x84]] }
 0x102   : > { %3794 = sst [smem:[#allocation59_spill]] %s3008_s18  ;;  %s3030_s16 = sld [smem:[#allocation13 + $0x104]] }
 0x103   : > { %3795 = sst [smem:[#allocation60_spill]] %s3010_s29  ;;  %s3076_s20 = sld [smem:[#allocation14]] }
 0x104   : > { %3796 = sst [smem:[#allocation61_spill]] %s3012_s28  ;;  %s3032_s28 = sld [smem:[#allocation13 + $0x184]] }
 0x105   : > { %3797 = sst [smem:[#allocation62_spill]] %s3014_s10  ;;  %s3034_s10 = sld [smem:[#allocation13 + $0x5]] }
 0x106   : > { %3798 = sst [smem:[#allocation63_spill]] %s3016_s30  ;;  %s3078_s26 = sld [smem:[#allocation13 + $0x87]] }
 0x107   : > { %3799 = sst [smem:[#allocation64_spill]] %s3018_s24  ;;  %s3036_s24 = sld [smem:[#allocation13 + $0x85]] }
 0x108   : > { %3800 = sst [smem:[#allocation65_spill]] %s3020_s27  ;;  %s3038_s27 = sld [smem:[#allocation13 + $0x105]] }
 0x109   : > { %3801 = sst [smem:[#allocation66_spill]] %s3022_s8  ;;  %s3042_s8 = sld [smem:[#allocation13 + $0x6]] }
 0x10a   : > { %3802 = sst [smem:[#allocation67_spill]] %s3024_s15  ;;  %s3040_s15 = sld [smem:[#allocation13 + $0x185]] }
 0x10b   : > { %3803 = sst [smem:[#allocation68_spill]] %s3026_s2  ;;  %s3046_s2 = sld [smem:[#allocation13 + $0x106]]  ;;  %v862_v49 = vstv %s3034_s10 }
 0x10c   : > { %3804 = sst [smem:[#allocation69_spill]] %s3028_s11  ;;  %s3044_s11 = sld [smem:[#allocation13 + $0x86]] }
 0x10d   : > { %3805 = sst [smem:[#allocation70_spill]] %s3030_s16  ;;  %s3050_s16 = sld [smem:[#allocation13 + $0x204]] }
 0x10e   : > { %3806 = sst [smem:[#allocation71_spill]] %s3032_s28  ;;  %s3048_s28 = sld [smem:[#allocation13 + $0x203]] }
 0x10f   : > { %3807 = sst [smem:[#allocation72_spill]] %s3036_s24  ;;  %s3052_s24 = sld [smem:[#allocation13 + $0x205]]  ;;  %v866_v58 = vstv %s3042_s8 }
 0x110   : > { %3808 = sst [smem:[#allocation73_spill]] %s3038_s27  ;;  %s3054_s27 = sld [smem:[#allocation13 + $0x283]] }
 0x111   : > { %3809 = sst [smem:[#allocation74_spill]] %s3040_s15  ;;  %s3056_s15 = sld [smem:[#allocation13 + $0x284]] }
 0x112   : > { %3810 = sst [smem:[#allocation75_spill]] %s3044_s11  ;;  %s3060_s11 = sld [smem:[#allocation13 + $0x303]] }
 0x113   : > { %3811 = sst [smem:[#allocation76_spill]] %s3046_s2  ;;  %s3062_s2 = sld [smem:[#allocation13 + $0x304]]  ;;  %v1058_v5 = vstv %s3050_s16 }
 0x114   : > { %3812 = sst [smem:[#allocation77_spill]] %s3048_s28  ;;  %s3068_s28 = sld [smem:[#allocation13 + $0x383]] }
 0x115   : > { %3816 = sst [smem:[#allocation81_spill]] %s3076_s20  ;;  %s3084_s25 = sld [smem:[#allocation14 + $0x1]]  ;;  %v1062_v7 = vstv %s3052_s24 }
 0x116   : > { %3813 = sst [smem:[#allocation78_spill]] %s3054_s27  ;;  %s3070_s27 = sld [smem:[#allocation13 + $0x7]] }
 0x117   : > { %s3820_s13 = sld [smem:[#allocation38_spill]]  ;;  %s3086_s17 = sld [smem:[#allocation13 + $0x107]] }
 0x118   : > { %3814 = sst [smem:[#allocation79_spill]] %s3060_s11  ;;  %s3102_s21 = sld [smem:[#allocation14 + $0x3]] }
 0x119   : > { %s3092_s4 = sld [smem:[#allocation14 + $0x2]]  ;;  %s3830_s6 = sld [smem:[#allocation72_spill]] }
 0x11a   : > { %3815 = sst [smem:[#allocation80_spill]] %s3068_s28  ;;  %s3829_s1 = sld [smem:[#allocation71_spill]] }
 0x11b   : > { %3819 = sst [smem:[#allocation82_spill]] %s3084_s25  ;;  %s3100_s25 = sld [smem:[#allocation13 + $0x187]] }
 0x11c   : > { %s3831_s7 = sld [smem:[#allocation73_spill]]  ;;  %s3112_s18 = sld [smem:[#allocation16 + $0x81]] }
 0x11d   : > { %v3107_v43 = vld [vmem:[%s3820_s13] sm:$0xff]  ;;  %v3115_v45 = vld [vmem:[%s3820_s13 + $0x8] sm:$0xff]  ;;  %s3120_s19 = sld [smem:[#allocation16 + $0x82]]  ;;  %s3122_s30 = sld [smem:[#allocation16 + $0x83]]  ;;  %v3143_v57 = vld [vmem:[%s3820_s13 + $0x10] sm:$0xff] }
 0x11e   : > { %s3836_s12 = sld [smem:[#allocation75_spill]]  ;;  %v3156_v62 = vmul.f32 %v3115_v45, %v862_v49  ;;  %s3167_s8 = sld [smem:[#allocation14 + $0x5]]  ;;  %v3182_v8 = vmul.f32 %v3143_v57, %v866_v58  ;;  %v968_v49 = vstv %s3086_s17 }
 0x11f   : > { %3823 = sst [smem:[#allocation38_spill]] %s3092_s4  ;;  %s3110_s4 = sld [smem:[#allocation16 + $0x80]]  ;;  %v909_v54 = vstv %s3830_s6 }
 0x120   : > { %v1007_v52 = vstv %s3829_s1  ;;  %s3151_s1 = sld [smem:[#allocation13 + $0x285]]  ;;  %s3153_s10 = sld [smem:[#allocation13 + $0x286]]  ;;  %v3170_v2 = vmul.f32 %v3115_v45, %v909_v54 }
 0x121   : > { %v3163_v1 = vmul.f32 %v1007_v52, %v3107_v43  ;;  %s3193_s24 = sld [smem:[#allocation13 + $0x307]]  ;;  %s3204_s16 = sld [smem:[#allocation14 + $0x6]] }
 0x122   : > { %v960_v55 = vstv %s3831_s7  ;;  %s3165_s7 = sld [smem:[#allocation13 + $0x287]]  ;;  %s3206_s29 = sld [smem:[#allocation16 + $0x86]] }
 0x123   : > { %3835 = sst [smem:[#allocation71_spill]] %s3122_s30  ;;  %v3173_v4 = vmul.f32 %v3115_v45, %v960_v55  ;;  %s3226_s6 = sld [smem:[#allocation13 + $0x386]] }
 0x124   : > { %v913_v60 = vstv %s3836_s12  ;;  %s3177_s12 = sld [smem:[#allocation16 + $0x85]]  ;;  %s3238_s17 = sld [smem:[#allocation14 + $0x7]] }
 0x125   : > { %s3240_s11 = sld [smem:[#allocation16 + $0x87]]  ;;  %s3250_s28 = sld [smem:[#allocation16]] }
 0x126   : > { %s3260_s20 = sld [smem:[#allocation16 + $0x2]]  ;;  %v1113_v54 = vstv %s3151_s1  ;;  %s3290_s30 = sld [smem:[#allocation17 + $0x1]] }
 0x127   : > { %s3292_s1 = sld [smem:[#allocation16 + $0x100]]  ;;  %v1172_v56 = vstv %s3193_s24  ;;  %s3891_s24 = sld [smem:[#allocation78_spill]] }
 0x128   : > { %3843 = sst [smem:[#allocation75_spill]] %s3206_s29  ;;  %s3875_s29 = sld [smem:[#allocation60_spill]] }
 0x129   : > { %v1219_v46 = vstv %s3226_s6  ;;  %s3872_s6 = sld [smem:[#allocation57_spill]] }
 0x12a   : > { %3841 = sst [smem:[#allocation73_spill]] %s3177_s12  ;;  %s3876_s12 = sld [smem:[#allocation61_spill]] }
 0x1c9   : > { %v516_v9 = vpop.f32.mrb[0].mxu0 }
 0x1ca   : > { %521 = vst.msk [vmem:[#allocation2] sm:$0xff] %vm520_vm2, %v516_v9  ;;  %v2073_v10 = vpop.f32.mrb[1].mxu0  ;;  %v3185_v9 = vmul.f32 %v3143_v57, %v913_v60  ;;  %v1121_v60 = vstv %s3165_s7  ;;  %s3873_s7 = sld [smem:[#allocation58_spill]] }
 0x1d1   : > { %v2940_v11 = vld [vmem:[#allocation2] sm:$0xff] }
 0x1d2   : > { %3774 = vst [vmem:[#allocation39_spill] sm:$0xff] %v2940_v11  ;;  %601 = vrot.lane.b32.xlu1 %v2940_v11, %s2567_s22  ;;  %524 = vrot.lane.b32.xlu0 %v2940_v11, %s2568_s5  ;;  %s2986_s22 = sld [smem:[#allocation13 + $0x1]] }
 0x1d3   : > { %s2988_s5 = sld [smem:[#allocation13 + $0x81]] }
 0x1d6   : > { %681 = vrot.lane.b32.xlu1 %v2940_v11, %s2569_s3  ;;  %603 = vrot.lane.b32.xlu0 %v2940_v11, %s2570_s23  ;;  %s2990_s3 = sld [smem:[#allocation13 + $0x101]] }
 0x1d7   : > { %s2992_s23 = sld [smem:[#allocation13 + $0x181]] }
 0x1d8   : > { %3783 = sst [smem:[#allocation48_spill]] %s2986_s22  ;;  %v846_v27 = vstv %s2986_s22  ;;  %s3821_s22 = sld [smem:[#allocation68_spill]] }
 0x1d9   : > { %3784 = sst [smem:[#allocation49_spill]] %s2988_s5  ;;  %v893_v28 = vstv %s2988_s5  ;;  %s3838_s5 = sld [smem:[#allocation76_spill]] }
 0x1da   : > { %759 = vrot.lane.b32.xlu1 %v2940_v11, %s2571_s9  ;;  %679 = vrot.lane.b32.xlu0 %v2940_v11, %s2572_s14  ;;  %s2994_s9 = sld [smem:[#allocation13 + $0x201]]  ;;  %3828 = sst [smem:[#allocation68_spill]] %s3102_s21 }
 0x1db   : > { %s2996_s14 = sld [smem:[#allocation13 + $0x281]]  ;;  %s3128_s21 = sld [smem:[#allocation13 + $0x206]] }
 0x1dc   : > { %3785 = sst [smem:[#allocation50_spill]] %s2990_s3  ;;  %v944_v29 = vstv %s2990_s3  ;;  %s3140_s3 = sld [smem:[#allocation16 + $0x84]] }
 0x1dd   : > { %3786 = sst [smem:[#allocation51_spill]] %s2992_s23  ;;  %v995_v30 = vstv %s2992_s23 }
 0x1de   : > { %757 = vrot.lane.b32.xlu0 %v2940_v11, %s2573_s0  ;;  %s2998_s0 = sld [smem:[#allocation13 + $0x301]]  ;;  %s3094_s23 = sld [smem:[#allocation13 + $0x186]]  ;;  %v858_v44 = vstv %s3821_s22 }
 0x1df   : > { %s3837_s22 = sld [smem:[#allocation74_spill]]  ;;  %v3133_v53 = vmul.f32 %v858_v44, %v3107_v43  ;;  %v964_v0 = vstv %s3838_s5  ;;  %v3212_v44 = vmul.f32 %v3115_v45, %v1062_v7  ;;  %3849 = sst [smem:[#allocation76_spill]] %s3250_s28 }
 0x1e0   : > { %3787 = sst [smem:[#allocation52_spill]] %s2994_s9  ;;  %v1046_v31 = vstv %s2994_s9  ;;  %s3825_s9 = sld [smem:[#allocation69_spill]] }
 0x1e1   : > { %3788 = sst [smem:[#allocation53_spill]] %s2996_s14  ;;  %v1097_v32 = vstv %s2996_s14  ;;  %s3179_s5 = sld [smem:[#allocation13 + $0x305]] }
 0x1e2   : > { %3832 = sst [smem:[#allocation69_spill]] %s3112_s18  ;;  %s3130_s18 = sld [smem:[#allocation13 + $0x207]] }
 0x1e3   : > { %3839 = sst [smem:[#allocation72_spill]] %s3140_s3  ;;  %s3228_s14 = sld [smem:[#allocation13 + $0x387]] }
 0x1e4   : > { %3789 = sst [smem:[#allocation54_spill]] %s2998_s0  ;;  %v1148_v33 = vstv %s2998_s0  ;;  %v1015_v55 = vstv %s3094_s23  ;;  %s3848_s23 = sld [smem:[#allocation68_spill]] }
 0x1e5   : > { %s3827_s0 = sld [smem:[#allocation70_spill]]  ;;  %v1011_v61 = vstv %s3837_s22  ;;  %s3191_s22 = sld [smem:[#allocation13 + $0x306]]  ;;  %v3256_v3 = vmul.f32 %v3143_v57, %v1015_v55 }
 0x1e6   : > { %v905_v48 = vstv %s3825_s9  ;;  %3834 = sst [smem:[#allocation70_spill]] %s3120_s19  ;;  %s3138_s9 = sld [smem:[#allocation14 + $0x4]]  ;;  %v3188_v10 = vmul.f32 %v3115_v45, %v1011_v61 }
 0x1e7   : > { %v3147_v59 = vmul.f32 %v905_v48, %v3107_v43  ;;  %v917_v48 = vstv %s3078_s26  ;;  %s3846_s26 = sld [smem:[#allocation69_spill]]  ;;  %3847 = sst [smem:[#allocation74_spill]] %s3240_s11  ;;  %v1164_v55 = vstv %s3179_s5 }
 0x1e8   : > { %3850 = sst [smem:[#allocation69_spill]] %s3260_s20  ;;  %s3300_s19 = sld [smem:[#allocation16 + $0x102]] }
 0x1e9   : > { %v1223_v42 = vstv %s3228_s14  ;;  %s3874_s5 = sld [smem:[#allocation59_spill]]  ;;  %s3877_s11 = sld [smem:[#allocation62_spill]] }
 0x1ea   : > { %s3878_s3 = sld [smem:[#allocation63_spill]]  ;;  %s3882_s28 = sld [smem:[#allocation64_spill]] }
 0x1eb   : > { %v956_v51 = vstv %s3827_s0  ;;  %s3272_s0 = sld [smem:[#allocation16 + $0x5]]  ;;  %s3883_s20 = sld [smem:[#allocation65_spill]] }
 0x1ec   : > { %v3159_v63 = vmul.f32 %v956_v51, %v3107_v43  ;;  %v1117_v51 = vstv %s3153_s10  ;;  %s3298_s10 = sld [smem:[#allocation16 + $0x101]]  ;;  %s3418_s14 = sld [smem:[#allocation16 + $0x103]] }
 0x244   : > { %v602_v12 = vpop.permute.xlu1 %601  ;;  %v525_v13 = vpop.permute.xlu0 %524 }
 0x245   : > { %2075 = vmatpush3.xpose.msk.msra.mxu1 %vm526_vm3, %v525_v13  ;;  %v3196_v13 = vmul.f32 %v3143_v57, %v964_v0  ;;  %v1019_v0 = vstv %s3100_s25  ;;  %s3252_s25 = sld [smem:[#allocation16 + $0x1]] }
 0x246   : > { %2079 = vmatprep.subr.mxu1 %v3708_v6 }
 0x248   : > { %2077 = vmatmul.mubr.msk.f32.vlgmr.msra.gmra.mrb[0].mxu1 %vm526_vm3, %v2940_v11  ;;  %v604_v14 = vpop.permute.xlu0 %603  ;;  %v682_v15 = vpop.permute.xlu1 %681 }
 0x249   : > { %2080 = vmatpush3.xpose.msk.msra.mxu1 %vm526_vm3, %v604_v14  ;;  %2081 = vmatprep.mubr.msk.f32.mxu1 %vm2565_vm0, %v3708_v6  ;;  %v1168_v14 = vstv %s3191_s22  ;;  %s3890_s22 = sld [smem:[#allocation77_spill]] }
 0x24a   : > { %2084 = vmatprep.subr.mxu1 %v3708_v6 }
 0x24c   : > { %2082 = vmatmul.mubr.msk.f32.vlgmr.msra.gmra.mrb[2].mxu1 %vm526_vm3, %v602_v12  ;;  %v680_v16 = vpop.permute.xlu0 %679  ;;  %v760_v17 = vpop.permute.xlu1 %759  ;;  %v1109_v12 = vstv %s3056_s15  ;;  %s3216_s15 = sld [smem:[#allocation13 + $0x384]] }
 0x24d   : > { %2085 = vmatpush3.xpose.msk.msra.mxu1 %vm526_vm3, %v682_v15  ;;  %2086 = vmatprep.mubr.msk.f32.mxu1 %vm2565_vm0, %v3708_v6  ;;  %v1160_v15 = vstv %s3062_s2  ;;  %v3222_v52 = vmul.f32 %v1109_v12, %v3107_v43  ;;  %s3262_s2 = sld [smem:[#allocation16 + $0x3]] }
 0x24e   : > { %2089 = vmatprep.subr.mxu1 %v3708_v6  ;;  %v3231_v58 = vmul.f32 %v1160_v15, %v3107_v43 }
 0x250   : > { %2087 = vmatmul.mubr.msk.f32.vlgmr.msra.gmra.mrb[4].mxu1 %vm526_vm3, %v680_v16  ;;  %v758_v18 = vpop.permute.xlu0 %757  ;;  %v3201_v16 = vld [vmem:[%s3820_s13 + $0x18] sm:$0xff]  ;;  %s3218_s13 = sld [smem:[#allocation13 + $0x385]] }
 0x251   : > { %2090 = vmatpush3.xpose.msk.msra.mxu1 %vm526_vm3, %v760_v17  ;;  %2091 = vmatprep.mubr.msk.f32.mxu1 %vm2565_vm0, %v3708_v6  ;;  %v870_v17 = vstv %s3070_s27  ;;  %v3244_v7 = vmul.f32 %v3201_v16, %v917_v48  ;;  %v3248_v15 = vmul.f32 %v3201_v16, %v968_v49  ;;  %v3267_v12 = vmul.f32 %v3201_v16, %v1019_v0  ;;  %s3270_s27 = sld [smem:[#allocation16 + $0x4]] }
 0x252   : > { %2099 = vmatprep.subr.mxu1 %v3708_v6  ;;  %v3235_v61 = vmul.f32 %v3201_v16, %v870_v17  ;;  %v1211_v48 = vstv %s3216_s15  ;;  %v3311_v17 = vmul.f32 %v3201_v16, %v1121_v60  ;;  %v3324_v40 = vmul.f32 %v3201_v16, %v1172_v56  ;;  %s3892_s15 = sld [smem:[#allocation79_spill]] }
 0x253   : > { %3851 = sst [smem:[#allocation68_spill]] %s3262_s2  ;;  %v3329_v39 = vmul.f32 %v1211_v48, %v3107_v43  ;;  %v3338_v56 = vmul.f32 %v3201_v16, %v1223_v42  ;;  %s3885_s2 = sld [smem:[#allocation66_spill]] }
 0x254   : > { %2092 = vmatmul.mubr.msk.f32.vlgmr.msra.gmra.mrb[6].mxu1 %vm526_vm3, %v758_v18  ;;  %v3209_v18 = vmul.f32 %v1058_v5, %v3107_v43  ;;  %v1070_v5 = vstv %s3130_s18  ;;  %s3278_s18 = sld [smem:[#allocation16 + $0x6]]  ;;  %3853 = vst [vmem:[#allocation84_spill] sm:$0xff] %v3324_v40  ;;  %v3881_v40 = vstv %s3874_s5  ;;  %s3436_s5 = sld [smem:[#allocation16 + $0x105]] }
 0x255   : > { %2101 = vmatprep.mubr.msk.f32.mxu1 %vm2565_vm0, %v3708_v6  ;;  %v1066_v6 = vstv %s3128_s21  ;;  %s3280_s21 = sld [smem:[#allocation16 + $0x7]]  ;;  %v3286_v49 = vmul.f32 %v3201_v16, %v1070_v5  ;;  %v3306_v5 = vmul.f32 %v3143_v57, %v1117_v51  ;;  %v3321_v51 = vmul.f32 %v3143_v57, %v1168_v14  ;;  %3854 = vst [vmem:[#allocation85_spill] sm:$0xff] %v3338_v56 }
 0x256   : > { %v3283_v0 = vmul.f32 %v3143_v57, %v1066_v6  ;;  %v3303_v6 = vmul.f32 %v3115_v45, %v1113_v54  ;;  %v1215_v50 = vstv %s3218_s13  ;;  %v3318_v54 = vmul.f32 %v3115_v45, %v1164_v55  ;;  %s3893_s13 = sld [smem:[#allocation80_spill]] }
 0x257   : > { %3852 = sst [smem:[#allocation83_spill]] %s3270_s27  ;;  %v3332_v41 = vmul.f32 %v3115_v45, %v1215_v50  ;;  %v3335_v14 = vmul.f32 %v3143_v57, %v1219_v46 }
 0x258   : > { %s3887_s27 = sld [smem:[#allocation67_spill]] }
 0x31b   : > { %v597_v60 = vpop.f32.mrb[0].mxu1 }
 0x31c   : > { %v2078_v46 = vpop.f32.mrb[1].mxu1  ;;  %v844_v45 = vmul.f32 %v843_v19, %v597_v60  ;;  %v942_v42 = vmul.f32 %v941_v21, %v597_v60  ;;  %v993_v16 = vmul.f32 %v992_v22, %v597_v60  ;;  %v1044_v55 = vmul.f32 %v1043_v23, %v597_v60 }
 0x31d   : > { %v891_v46 = vmul.f32 %v890_v20, %v597_v60  ;;  %v1095_v47 = vmul.f32 %v1094_v24, %v597_v60  ;;  %v1146_v57 = vmul.f32 %v1145_v25, %v597_v60  ;;  %v1197_v50 = vmul.f32 %v1196_v26, %v597_v60 }
 0x31f   : > { %v675_v48 = vpop.f32.mrb[2].mxu1 }
 0x320   : > { %v847_v43 = vmul.f32 %v846_v27, %v675_v48  ;;  %v894_v19 = vmul.f32 %v893_v28, %v675_v48  ;;  %v945_v20 = vmul.f32 %v944_v29, %v675_v48  ;;  %v996_v21 = vmul.f32 %v995_v30, %v675_v48  ;;  %v2083_v22 = vpop.f32.mrb[3].mxu1 }
 0x321   : > { %v1047_v23 = vmul.f32 %v1046_v31, %v675_v48  ;;  %v1098_v24 = vmul.f32 %v1097_v32, %v675_v48  ;;  %v1149_v25 = vmul.f32 %v1148_v33, %v675_v48  ;;  %v1200_v26 = vmul.f32 %v1199_v34, %v675_v48 }
 0x322   : > { %v848_v27 = vadd.f32 %v847_v43, %v844_v45  ;;  %v895_v28 = vadd.f32 %v894_v19, %v891_v46  ;;  %v946_v29 = vadd.f32 %v945_v20, %v942_v42  ;;  %v997_v30 = vadd.f32 %v996_v21, %v993_v16 }
 0x323   : > { %v1048_v60 = vadd.f32 %v1047_v23, %v1044_v55  ;;  %v1099_v22 = vadd.f32 %v1098_v24, %v1095_v47  ;;  %v1150_v38 = vadd.f32 %v1149_v25, %v1146_v57  ;;  %v1201_v37 = vadd.f32 %v1200_v26, %v1197_v50  ;;  %v753_v31 = vpop.f32.mrb[4].mxu1 }
 0x324   : > { %v851_v36 = vmul.f32 %v850_v35, %v753_v31  ;;  %v3879_v32 = vstv %s3872_s6  ;;  %v3880_v33 = vstv %s3873_s7  ;;  %v1000_v34 = vmul.f32 %v3881_v40, %v753_v31  ;;  %v2088_v43 = vpop.f32.mrb[5].mxu1  ;;  %s3420_s6 = sld [smem:[#allocation16 + $0x104]]  ;;  %s3430_s7 = sld [smem:[#allocation17]] }
 0x325   : > { %v898_v11 = vmul.f32 %v3879_v32, %v753_v31  ;;  %v949_v56 = vmul.f32 %v3880_v33, %v753_v31  ;;  %v3884_v48 = vstv %s3875_s29  ;;  %v3886_v42 = vstv %s3876_s12  ;;  %s3442_s29 = sld [smem:[#allocation16 + $0x106]]  ;;  %s3444_s12 = sld [smem:[#allocation16 + $0x107]] }
 0x326   : > { %v1051_v45 = vmul.f32 %v3884_v48, %v753_v31  ;;  %v1102_v47 = vmul.f32 %v3886_v42, %v753_v31  ;;  %v3888_v55 = vstv %s3877_s11  ;;  %v3889_v57 = vstv %s3878_s3  ;;  %s3450_s11 = sld [smem:[#allocation16 + $0x180]]  ;;  %s3452_s3 = sld [smem:[#allocation16 + $0x181]] }
 0x327   : > { %v1153_v50 = vmul.f32 %v3888_v55, %v753_v31  ;;  %v1204_v35 = vmul.f32 %v3889_v57, %v753_v31  ;;  %v852_v16 = vadd.f32 %v851_v36, %v848_v27  ;;  %v899_v46 = vadd.f32 %v898_v11, %v895_v28  ;;  %v831_v25 = vpop.f32.mrb[6].mxu1 }
 0x328   : > { %v950_v19 = vadd.f32 %v949_v56, %v946_v29  ;;  %v1001_v40 = vadd.f32 %v1000_v34, %v997_v30  ;;  %v1052_v20 = vadd.f32 %v1051_v45, %v1048_v60  ;;  %v1103_v21 = vadd.f32 %v1102_v47, %v1099_v22  ;;  %v2093_v57 = vpop.f32.mrb[7].mxu1 }
 0x329   : > { %v1154_v23 = vadd.f32 %v1153_v50, %v1150_v38  ;;  %v1205_v24 = vadd.f32 %v1204_v35, %v1201_v37  ;;  %v3894_v26 = vstv %s3882_s28  ;;  %v3895_v33 = vstv %s3883_s20  ;;  %s3902_s28 = sld [smem:[#allocation81_spill]]  ;;  %s3903_s20 = sld [smem:[#allocation82_spill]] }
 0x32a   : > { %v855_v32 = vmul.f32 %v3894_v26, %v831_v25  ;;  %v902_v43 = vmul.f32 %v3895_v33, %v831_v25  ;;  %v3896_v48 = vstv %s3885_s2  ;;  %v3897_v55 = vstv %s3887_s27  ;;  %s3904_s2 = sld [smem:[#allocation38_spill]] }
 0x32b   : > { %v953_v42 = vmul.f32 %v3896_v48, %v831_v25  ;;  %v1004_v31 = vmul.f32 %v3897_v55, %v831_v25  ;;  %v3898_v36 = vstv %s3890_s22  ;;  %v3899_v11 = vstv %s3891_s24  ;;  %s3458_s27 = sld [smem:[#allocation16 + $0x182]]  ;;  %s3468_s22 = sld [smem:[#allocation16 + $0x183]] }
 0x32c   : > { %v1055_v27 = vmul.f32 %v3898_v36, %v831_v25  ;;  %v1106_v28 = vmul.f32 %v3899_v11, %v831_v25  ;;  %v3900_v56 = vstv %s3892_s15  ;;  %v3901_v30 = vstv %s3893_s13  ;;  %s3470_s24 = sld [smem:[#allocation16 + $0x184]]  ;;  %s3485_s15 = sld [smem:[#allocation16 + $0x185]] }
 0x32d   : > { %v1157_v29 = vmul.f32 %v3900_v56, %v831_v25  ;;  %v1208_v60 = vmul.f32 %v3901_v30, %v831_v25  ;;  %v856_v38 = vadd.f32 %v855_v32, %v852_v16  ;;  %v903_v37 = vadd.f32 %v902_v43, %v899_v46  ;;  %v3910_v32 = vld [vmem:[#allocation84_spill] sm:$0xff]  ;;  %s3912_s13 = sld [smem:[#allocation70_spill]] }
 0x32e   : > { %v954_v22 = vadd.f32 %v953_v42, %v950_v19  ;;  %v1005_v34 = vadd.f32 %v1004_v31, %v1001_v40  ;;  %v1056_v45 = vadd.f32 %v1055_v27, %v1052_v20  ;;  %v1107_v47 = vadd.f32 %v1106_v28, %v1103_v21  ;;  %v3911_v42 = vld [vmem:[#allocation85_spill] sm:$0xff] }
 0x32f   : > { %v1158_v50 = vadd.f32 %v1157_v29, %v1154_v23  ;;  %v1209_v35 = vadd.f32 %v1208_v60, %v1205_v24  ;;  %v860_v26 = vadd.f32 %v3133_v53, %v856_v38  ;;  %v907_v33 = vadd.f32 %v3147_v59, %v903_v37 }
 0x330   : > { %v958_v48 = vadd.f32 %v3159_v63, %v954_v22  ;;  %v1009_v25 = vadd.f32 %v3163_v1, %v1005_v34  ;;  %v1060_v16 = vadd.f32 %v3209_v18, %v1056_v45  ;;  %v1111_v46 = vadd.f32 %v3222_v52, %v1107_v47 }
 0x331   : > { %v1162_v19 = vadd.f32 %v3231_v58, %v1158_v50  ;;  %v1213_v40 = vadd.f32 %v3329_v39, %v1209_v35  ;;  %v864_v20 = vadd.f32 %v3156_v62, %v860_v26  ;;  %v911_v53 = vadd.f32 %v3170_v2, %v907_v33 }
 0x332   : > { %v962_v59 = vadd.f32 %v3173_v4, %v958_v48  ;;  %v1013_v63 = vadd.f32 %v3188_v10, %v1009_v25  ;;  %v1064_v1 = vadd.f32 %v3212_v44, %v1060_v16  ;;  %v1115_v18 = vadd.f32 %v3303_v6, %v1111_v46 }
 0x333   : > { %v1166_v52 = vadd.f32 %v3318_v54, %v1162_v19  ;;  %v1217_v39 = vadd.f32 %v3332_v41, %v1213_v40  ;;  %v868_v62 = vadd.f32 %v3182_v8, %v864_v20  ;;  %v915_v2 = vadd.f32 %v3185_v9, %v911_v53 }
 0x334   : > { %v966_v4 = vadd.f32 %v3196_v13, %v962_v59  ;;  %v1017_v10 = vadd.f32 %v3256_v3, %v1013_v63  ;;  %v1068_v41 = vadd.f32 %v3283_v0, %v1064_v1  ;;  %v1119_v44 = vadd.f32 %v3306_v5, %v1115_v18 }
 0x335   : > { %v1170_v8 = vadd.f32 %v3321_v51, %v1166_v52  ;;  %v1221_v9 = vadd.f32 %v3335_v14, %v1217_v39  ;;  %v872_v3 = vadd.f32 %v3235_v61, %v868_v62  ;;  %v919_v13 = vadd.f32 %v3244_v7, %v915_v2 }
 0x336   : > { %v970_v58 = vadd.f32 %v3248_v15, %v966_v4  ;;  %v1021_v0 = vadd.f32 %v3267_v12, %v1017_v10  ;;  %v1072_v6 = vadd.f32 %v3286_v49, %v1068_v41  ;;  %v1123_v5 = vadd.f32 %v3311_v17, %v1119_v44 }
 0x337   : > { %v1035_v54 = vstv %s3418_s14  ;;  %v1086_v51 = vstv %s3420_s6  ;;  %v3905_v61 = vstv %s3902_s28  ;;  %v3906_v14 = vstv %s3903_s20  ;;  %s3918_s14 = sld [smem:[#allocation69_spill]]  ;;  %s2577_s6 = smov 48  }
 0x338   : > { %v875_v7 = vadd.f32 %v3905_v61, %v872_v3  ;;  %v922_v15 = vadd.f32 %v3906_v14, %v919_v13  ;;  %v3907_v21 = vstv %s3904_s2  ;;  %v3908_v49 = vstv %s3848_s23  ;;  %s3913_s23 = sld [smem:[#allocation76_spill]] }
 0x339   : > { %v973_v12 = vadd.f32 %v3907_v21, %v970_v58  ;;  %v1024_v17 = vadd.f32 %v3908_v49, %v1021_v0  ;;  %v3909_v23 = vstv %s3138_s9  ;;  %v1174_v43 = vadd.f32 %v3910_v32, %v1170_v8  ;;  %s3915_s9 = sld [smem:[#allocation71_spill]] }
 0x33a   : > { %v1075_v24 = vadd.f32 %v3909_v23, %v1072_v6  ;;  %v1225_v55 = vadd.f32 %v3911_v42, %v1221_v9  ;;  %v1247_v31 = vstv %s3430_s7  ;;  %v876_v57 = vmax.f32 %v875_v7, 0.0  ;;  %s2578_s7 = smov 8  }
 0x33b   : > { %v923_v36 = vmax.f32 %v922_v15, 0.0  ;;  %v974_v27 = vmax.f32 %v973_v12, 0.0  ;;  %v1137_v11 = vstv %s3436_s5  ;;  %v1025_v28 = vmax.f32 %v1024_v17, 0.0  ;;  %s2579_s5 = smov 16  }
 0x33c   : > { %v3914_v56 = vstv %s3167_s8  ;;  %v1188_v30 = vstv %s3442_s29  ;;  %v1239_v60 = vstv %s3444_s12  ;;  %v3916_v38 = vstv %s3110_s4  ;;  %s3923_s4 = sld [smem:[#allocation72_spill]]  ;;  %s3926_s8 = sld [smem:[#allocation68_spill]] }
 0x33d   : > { %v1126_v29 = vadd.f32 %v3914_v56, %v1123_v5  ;;  %v882_v37 = vmul.f32 %v3916_v38, %v876_v57  ;;  %v3917_v22 = vstv %s3846_s26  ;;  %v887_v45 = vstv %s3450_s11  ;;  %s3930_s26 = sld [smem:[#allocation83_spill]]  ;;  %s3949_s12 = sld [smem:[#allocation37_spill]] }
 0x33e   : > { %v930_v34 = vmul.f32 %v3917_v22, %v923_v36  ;;  %v937_v47 = vstv %s3452_s3  ;;  %v1076_v50 = vmax.f32 %v1075_v24, 0.0  ;;  %v3919_v35 = vstv %s3204_s16  ;;  %s3929_s16 = sld [smem:[#allocation73_spill]]  ;;  %s3948_s29 = sld [smem:[#allocation32_spill]] }
 0x33f   : > { %v1177_v26 = vadd.f32 %v3919_v35, %v1174_v43  ;;  %v3920_v33 = vstv %s3238_s17  ;;  %v988_v25 = vstv %s3458_s27  ;;  %v3921_v46 = vstv %s3912_s13  ;;  %s3934_s17 = sld [smem:[#allocation75_spill]]  ;;  %s2580_s11 = smov 24  }
 0x340   : > { %v1228_v48 = vadd.f32 %v3920_v33, %v1225_v55  ;;  %v931_v16 = vadd.f32 %v930_v34, %v882_v37  ;;  %v981_v19 = vmul.f32 %v3921_v46, %v974_v27  ;;  %v3922_v40 = vstv %s3913_s23  ;;  %s3950_s3 = sld [smem:[#allocation35_spill]] }
 0x341   : > { %v879_v20 = vmul.f32 %v3922_v40, %v876_v57  ;;  %v3924_v53 = vstv %s3252_s25  ;;  %v3925_v63 = vstv %s3915_s9  ;;  %v1127_v18 = vmax.f32 %v1126_v29, 0.0  ;;  %s3524_s25 = sld [smem:[#allocation16 + $0x186]] }
 0x342   : > { %v926_v59 = vmul.f32 %v3924_v53, %v923_v36  ;;  %v1032_v1 = vmul.f32 %v3925_v63, %v1025_v28  ;;  %v1039_v52 = vstv %s3468_s22  ;;  %v1090_v39 = vstv %s3470_s24 }
 0x343   : > { %v982_v62 = vadd.f32 %v981_v19, %v931_v16  ;;  %v3927_v4 = vstv %s3918_s14  ;;  %v3928_v41 = vstv %s3292_s1  ;;  %v1178_v8 = vmax.f32 %v1177_v26, 0.0  ;;  %s3938_s1 = sld [smem:[#allocation74_spill]]  ;;  %s3951_s20 = sshll.u32 %s3949_s12, 3 }
 0x344   : > { %v927_v2 = vadd.f32 %v926_v59, %v879_v20  ;;  %v977_v10 = vmul.f32 %v3927_v4, %v974_v27  ;;  %v885_v44 = vmul.f32 %v3928_v41, %v876_v57  ;;  %v1229_v9 = vmax.f32 %v1228_v48, 0.0  ;;  %s2034_s28 = sshll.u32 %s3948_s29, 7  ;;  %s440_s2 = scalar_lea.vmem [#allocation19], %s3951_s20 }
 0x345   : > { %v3931_v3 = vstv %s3298_s10  ;;  %v1141_v58 = vstv %s3485_s15  ;;  %v1033_v0 = vadd.f32 %v1032_v1, %v982_v62  ;;  %v3932_v6 = vstv %s3923_s4  ;;  %s3532_s10 = sld [smem:[#allocation16 + $0x187]]  ;;  %s1736_s27 = sshll.u32 %s440_s2, 4  ;;  %s3598_s27 = int_to_ptr.vmem [resolvable:$true] %s1736_s27 }
 0x346   : > { %v934_v13 = vmul.f32 %v3931_v3, %v923_v36  ;;  %v1083_v5 = vmul.f32 %v3932_v6, %v1076_v50  ;;  %v978_v61 = vadd.f32 %v977_v10, %v927_v2  ;;  %v3933_v7 = vstv %s3926_s8  ;;  %s3952_s15 = sld [smem:[#allocation94_spill]]  ;;  %s1723_s23 = scalar_lea.sflag [#allocation6], %s3949_s12 }
 0x347   : > { %v1028_v14 = vmul.f32 %v3933_v7, %v1025_v28  ;;  %v3935_v21 = vstv %s3300_s19  ;;  %v888_v49 = vmul.f32 %v887_v45, %v876_v57  ;;  %v938_v17 = vmul.f32 %v937_v47, %v923_v36  ;;  %s3538_s19 = sld [smem:[#allocation17 + $0x2]]  ;;  %s2461_s9 = scalar_lea.vmem %s3598_s27, 128 }
 0x348   : > { %v935_v15 = vadd.f32 %v934_v13, %v885_v44  ;;  %v985_v12 = vmul.f32 %v3935_v21, %v974_v27  ;;  %v1084_v23 = vadd.f32 %v1083_v5, %v1033_v0  ;;  %v3936_v24 = vstv %s3929_s16  ;;  %p2462_p10 = scmp.ne.s32.totalorder %s3598_s27, %s2461_s9  ;;  %p3953_p11 = scmp.ne.s32.totalorder %s3950_s3, 0 }
 0x349   : > { %v1134_v32 = vmul.f32 %v3936_v24, %v1127_v18  ;;  %v1029_v43 = vadd.f32 %v1028_v14, %v978_v61  ;;  %v3937_v42 = vstv %s3930_s26  ;;  %v1036_v29 = vmul.f32 %v1035_v54, %v1025_v28  ;;  %s2581_s14 = smov [#allocation19]  }
 0x34a   : > { %v1079_v55 = vmul.f32 %v3937_v42, %v1076_v50  ;;  %v986_v56 = vadd.f32 %v985_v12, %v935_v15  ;;  %v939_v38 = vadd.f32 %v938_v17, %v888_v49  ;;  %v989_v37 = vmul.f32 %v988_v25, %v974_v27  ;;  %p2463_p12 = pnand %p2462_p10, %p3953_p11  ;;  %s2465_s4 = sshll.u32 %s2581_s14, 4  ;;  %s2466_s4 = int_to_ptr.vmem [resolvable:$false] %s2465_s4 }
 0x34b   : > { %v1135_v22 = vadd.f32 %v1134_v32, %v1084_v23  ;;  %v3939_v34 = vstv %s3934_s17  ;;  %v3940_v36 = vstv %s3272_s0  ;;  %v1087_v26 = vmul.f32 %v1086_v51, %v1076_v50  ;;  %s3546_s0 = sld [smem:[#allocation17 + $0x3]]  ;;  %s2467_s8 = scalar_lea.vmem %s2466_s4, 256 }
 0x34c   : > { %v1185_v35 = vmul.f32 %v3939_v34, %v1178_v8  ;;  %v1080_v57 = vadd.f32 %v1079_v55, %v1029_v43  ;;  %v1130_v45 = vmul.f32 %v3940_v36, %v1127_v18  ;;  %v1037_v47 = vadd.f32 %v1036_v29, %v986_v56  ;;  %v3945_v34 = vld [vmem:[#allocation39_spill] sm:$0xff]  ;;  %s3596_s13 = scalar_lea.hbm %s3952_s15, %s2034_s28  ;;  %p2464_p1 = pneg %p2463_p12 }
 0x34d   : > { %v990_v33 = vadd.f32 %v989_v37, %v939_v38  ;;  %v1040_v48 = vmul.f32 %v1039_v52, %v1025_v28  ;;  %v3941_v54 = vstv %s3938_s1  ;;  %v3942_v25 = vstv %s3278_s18  ;;  %s2575_s18 = smov 64   ;;  %p2468_p2 = scmp.lt.s32.totalorder %s3598_s27, %s2466_s4 }
 0x34e   : > { %v1186_v16 = vadd.f32 %v1185_v35, %v1135_v22  ;;  %v1236_v46 = vmul.f32 %v3941_v54, %v1229_v9  ;;  %v1131_v27 = vadd.f32 %v1130_v45, %v1080_v57  ;;  %v1181_v19 = vmul.f32 %v3942_v25, %v1178_v8  ;;  %p2469_p8 = scmp.lt.s32.totalorder %s2467_s8, %s2461_s9 }
 0x34f   : > { %v1088_v40 = vadd.f32 %v1087_v26, %v1037_v47  ;;  %v1138_v20 = vmul.f32 %v1137_v11, %v1127_v18  ;;  %v1041_v53 = vadd.f32 %v1040_v48, %v990_v33  ;;  %v1091_v59 = vmul.f32 %v1090_v39, %v1076_v50 }
 0x350   : > { %v1237_v63 = vadd.f32 %v1236_v46, %v1186_v16  ;;  %v1182_v51 = vadd.f32 %v1181_v19, %v1131_v27  ;;  %v3943_v1 = vstv %s3280_s21  ;;  %v1192_v52 = vstv %s3524_s25  ;;  %s2576_s21 = smov 40   ;;  %p2470_p5 = por %p2469_p8, %p2468_p2 }
 0x351   : > { %v1232_v28 = vmul.f32 %v3943_v1, %v1229_v9  ;;  %v1139_v62 = vadd.f32 %v1138_v20, %v1088_v40  ;;  %v1189_v2 = vmul.f32 %v1188_v30, %v1178_v8  ;;  %v1092_v4 = vadd.f32 %v1091_v59, %v1041_v53 }
 0x352   : > { %v1142_v10 = vmul.f32 %v1141_v58, %v1127_v18  ;;  %v3944_v41 = vstv %s3290_s30  ;;  %v1243_v13 = vstv %s3532_s10  ;;  %v1240_v50 = vmul.f32 %v1239_v60, %v1229_v9  ;;  %s2574_s30 = smov 56   ;;  %p2471_p3 = pnand %p2470_p5, %p2464_p1 }
 0x353   : > { %v1342_v44 = vadd.f32 %v3944_v41, %v1237_v63  ;;  %v1233_v3 = vadd.f32 %v1232_v28, %v1182_v51  ;;  %v1190_v11 = vadd.f32 %v1189_v2, %v1139_v62  ;;  %v1193_v0 = vmul.f32 %v1192_v52, %v1178_v8 }
 0x354   : > { %v1143_v39 = vadd.f32 %v1142_v10, %v1092_v4  ;;  %v1442_v61 = vstv %s3538_s19  ;;  %v1244_v14 = vmul.f32 %v1243_v13, %v1229_v9  ;;  %v1543_v58 = vstv %s3546_s0 }
 0x355   : > { %v1343_v6 = vsel %vm526_vm3, %v1342_v44, -inf  ;;  %v1248_v5 = vadd.f32 %v1247_v31, %v1233_v3  ;;  %v1241_v7 = vadd.f32 %v1240_v50, %v1190_v11  ;;  %v3946_v54 = vmov 0.0  }
 0x356   : > { %1344 = vmax.xlane.f32.xlu0 %v1343_v6  ;;  %v1194_v30 = vadd.f32 %v1193_v0, %v1143_v39  ;;  %v3947_v3 = vmov 0.0|0.0  }
 0x357   : > { %v1249_v18 = vsel %vm526_vm3, %v1248_v5, -inf  ;;  %v1443_v15 = vadd.f32 %v1442_v61, %v1241_v7 }
 0x358   : > { %1250 = vmax.xlane.f32.xlu1 %v1249_v18  ;;  %v1245_v21 = vadd.f32 %v1244_v14, %v1194_v30  ;;  %v1644_v18 = vld [vmem:[#allocation11] sm:$0xff] }
 0x359   : > { %v1444_v12 = vsel %vm526_vm3, %v1443_v15, -inf }
 0x35a   : > { %v1544_v60 = vadd.f32 %v1543_v58, %v1245_v21  ;;  %1445 = vmax.xlane.f32.xlu0 %v1444_v12  ;;  %v1645_v58 = vld [vmem:[#allocation11 + $0x8] sm:$0xff]  ;;  %v1647_v12 = vld [vmem:[#allocation11 + $0x18] sm:$0xff] }
 0x35b   : > { %v2132_v21 = vpack.c.bf16 %v1645_v58, %v1644_v18 }
 0x35c   : > { %v1545_v8 = vsel %vm526_vm3, %v1544_v60, -inf }
 0x35d   : > { %1546 = vmax.xlane.f32.xlu1 %v1545_v8 }
 0x3e3   : > { %v1345_v49 = vpop.xlane.xlu0 %1344 }
 0x3e4   : > { %v1346_v31 = vsub.f32 %v1342_v44, %v1345_v49 }
 0x3e5   : > { %v1251_v17 = vpop.xlane.xlu1 %1250 }
 0x3e6   : > { %v1347_v23 = vmul.f32 1.442695, %v1346_v31  ;;  %v1252_v24 = vsub.f32 %v1248_v5, %v1251_v17 }
 0x3e7   : > { %v1446_v32 = vpop.xlane.xlu0 %1445 }
 0x3e8   : > { %2269 = vpow2.f32 %v1347_v23  ;;  %v1253_v9 = vmul.f32 1.442695, %v1252_v24  ;;  %v1447_v43 = vsub.f32 %v1443_v15, %v1446_v32  ;;  %v1646_v15 = vld [vmem:[#allocation11 + $0x10] sm:$0xff] }
 0x3ea   : > { %2271 = vpow2.f32 %v1253_v9  ;;  %v1448_v42 = vmul.f32 1.442695, %v1447_v43  ;;  %v1547_v35 = vpop.xlane.xlu1 %1546 }
 0x3eb   : > { %v1548_v57 = vsub.f32 %v1544_v60, %v1547_v35  ;;  %v2135_v60 = vpack.c.bf16 %v1647_v12, %v1646_v15 }
 0x3ec   : > { %2273 = vpow2.f32 %v1448_v42 }
 0x3ed   : > { %v1549_v36 = vmul.f32 1.442695, %v1548_v57 }
 0x3ef   : > { %2275 = vpow2.f32 %v1549_v36 }
 0x3f2   : > { %v2270_v55 = vpop.eup %2269 }
 0x3f3   : > { %v1349_v56 = vsel %vm526_vm3, %v2270_v55, 0.0 }
 0x3f4   : > { %v2272_v29 = vpop.eup %2271  ;;  %1350 = vadd.xlane.f32.xlu1 %v1349_v56 }
 0x3f5   : > { %v1255_v38 = vsel %vm526_vm3, %v2272_v29, 0.0 }
 0x3f6   : > { %1256 = vadd.xlane.f32.xlu0 %v1255_v38  ;;  %v2274_v37 = vpop.eup %2273 }
 0x3f7   : > { %v1450_v22 = vsel %vm526_vm3, %v2274_v37, 0.0 }
 0x3f9   : > { %v2276_v45 = vpop.eup %2275 }
 0x3fa   : > { %1451 = vadd.xlane.f32.xlu0 %v1450_v22  ;;  %v1551_v47 = vsel %vm526_vm3, %v2276_v45, 0.0 }
 0x405   : > { %1359 = vrot.lane.b32.xlu1 %v3945_v34, %s2574_s30 }
 0x410   : > { %1263 = vrot.lane.b32.xlu0 %v3945_v34, %s2575_s18 }
 0x414   : > { %1561 = vrot.lane.b32.xlu0 %v3945_v34, %s2576_s21 }
 0x429   : > { %1552 = vadd.xlane.f32.xlu1 %v1551_v47 }
 0x43a   : > { %1460 = vrot.lane.b32.xlu1 %v3945_v34, %s2577_s6 }
 0x481   : > { %v1351_v26 = vpop.xlane.xlu1 %1350 }
 0x482   : > { %2277 = vrcp.f32 %v1351_v26 }
 0x483   : > { %v1257_v33 = vpop.xlane.xlu0 %1256 }
 0x484   : > { %2279 = vrcp.f32 %v1257_v33 }
 0x485   : > { %v1360_v48 = vpop.permute.xlu1 %1359 }
 0x486   : > { %2100 = vmatpush3.msra.mxu1 %v1360_v48 }
 0x487   : > { %v1452_v16 = vpop.xlane.xlu0 %1451  ;;  %2109 = vmatprep.subr.mxu1 %v3946_v54 }
 0x488   : > { %2281 = vrcp.f32 %v1452_v16 }
 0x48b   : > { %v1264_v46 = vpop.permute.xlu0 %1263 }
 0x48c   : > { %v2278_v27 = vpop.eup %2277  ;;  %2095 = vmatpush3.msra.mxu0 %v1264_v46 }
 0x48d   : > { %v1353_v25 = vmul.f32 %v2278_v27, %v1351_v26  ;;  %2104 = vmatprep.subr.mxu0 %v3946_v54 }
 0x48e   : > { %v2280_v19 = vpop.eup %2279 }
 0x48f   : > { %v1259_v40 = vmul.f32 %v2280_v19, %v1257_v33  ;;  %v1354_v20 = vsub.f32 2.0, %v1353_v25  ;;  %v1562_v28 = vpop.permute.xlu0 %1561 }
 0x491   : > { %v1260_v53 = vsub.f32 2.0, %v1259_v40  ;;  %v1355_v59 = vmul.f32 %v2278_v27, %v1354_v20 }
 0x492   : > { %v2282_v52 = vpop.eup %2281 }
 0x493   : > { %v1261_v63 = vmul.f32 %v2280_v19, %v1260_v53  ;;  %v1356_v51 = vmul.f32 %v2270_v55, %v1355_v59  ;;  %v1454_v62 = vmul.f32 %v2282_v52, %v1452_v16 }
 0x495   : > { %v1262_v1 = vmul.f32 %v2272_v29, %v1261_v63  ;;  %2102 = vmatmul.mubr.msk.f32.vlgmr.msra.gmra.mrb[8].mxu1 %vm526_vm3, %v1356_v51  ;;  %v1455_v2 = vsub.f32 2.0, %v1454_v62 }
 0x496   : > { %2110 = vmatpush3.msra.mxu1 %v1562_v28  ;;  %2111 = vmatprep.mubr.msk.f32.mxu1 %vm2565_vm0, %v3946_v54 }
 0x497   : > { %2097 = vmatmul.mubr.msk.f32.vlgmr.msra.gmra.mrb[2].mxu0 %vm526_vm3, %v1262_v1  ;;  %v1456_v4 = vmul.f32 %v2282_v52, %v1455_v2 }
 0x498   : > { %2106 = vmatprep.mubr.msk.f32.mxu0 %vm2565_vm0, %v3946_v54 }
 0x499   : > { %v1457_v41 = vmul.f32 %v2274_v37, %v1456_v4 }
 0x4b6   : > { %v1553_v10 = vpop.xlane.xlu1 %1552 }
 0x4b7   : > { %2283 = vrcp.f32 %v1553_v10 }
 0x4ba   : > { %v1461_v44 = vpop.permute.xlu1 %1460 }
 0x4bb   : > { %2105 = vmatpush3.msra.mxu0 %v1461_v44 }
 0x4bc   : > { %2107 = vmatmul.mubr.msk.f32.vlgmr.msra.gmra.mrb[4].mxu0 %vm526_vm3, %v1457_v41  ;;  %2131 = vmatprep.subr.bf16.mxu0 %v3947_v3 }
 0x4bd   : > { %2122 = vmatprep.mubr.msk.f32.mxu0 %vm2565_vm0, %v3946_v54  ;;  %2133 = vmatpush3.bf16.msra.mxu0 %v2132_v21 }
 0x4be   : > { %2134 = vmatprep.subr.bf16.mxu0 %v3947_v3 }
 0x4c1   : > { %v2284_v13 = vpop.eup %2283  ;;  %2136 = vmatpush3.bf16.msra.mxu0 %v2135_v60 }
 0x4c2   : > { %v1555_v11 = vmul.f32 %v2284_v13, %v1553_v10 }
 0x4c4   : > { %v1556_v50 = vsub.f32 2.0, %v1555_v11 }
 0x4c6   : > { %v1557_v39 = vmul.f32 %v2284_v13, %v1556_v50 }
 0x4c8   : > { %v1558_v0 = vmul.f32 %v2276_v45, %v1557_v39 }
 0x4ca   : > { %2112 = vmatmul.mubr.msk.f32.vlgmr.msra.gmra.mrb[10].mxu1 %vm526_vm3, %v1558_v0 }
 0x568   : > { %v1431_v6 = vpop.f32.mrb[8].mxu1 }
 0x569   : > { %1436 = vrot.lane.b32.xlu1 %v1431_v6, %s2578_s7  ;;  %v2103_v5 = vpop.f32.mrb[9].mxu1 }
 0x56a   : > { %v1335_v61 = vpop.f32.mrb[2].mxu0 }
 0x56b   : > { %1339 = vst.msk [vmem:[#allocation3] sm:$0xff] %vm526_vm3, %v1335_v61  ;;  %v2098_v7 = vpop.f32.mrb[3].mxu0 }
 0x58f   : > { %v1532_v30 = vpop.f32.mrb[4].mxu0 }
 0x590   : > { %1537 = vrot.lane.b32.xlu0 %v1532_v30, %s2579_s5  ;;  %v2108_v14 = vpop.f32.mrb[5].mxu0 }
 0x59d   : > { %v1633_v8 = vpop.f32.mrb[10].mxu1 }
 0x59e   : > { %1638 = vrot.lane.b32.xlu1 %v1633_v8, %s2580_s11  ;;  %v2113_v49 = vpop.f32.mrb[11].mxu1 }
 0x5db   : > { %v1437_v31 = vpop.permute.xlu1 %1436 }
 0x5dc   : > { %1440 = vst.msk [vmem:[#allocation3] sm:$0xff] %vm1439_vm4, %v1437_v31 }
 0x602   : > { %v1538_v17 = vpop.permute.xlu0 %1537 }
 0x603   : > { %1541 = vst.msk [vmem:[#allocation3] sm:$0xff] %vm1540_vm5, %v1538_v17 }
 0x610   : > { %v1639_v23 = vpop.permute.xlu1 %1638 }
 0x611   : > { %1642 = vst.msk [vmem:[#allocation3] sm:$0xff] %vm1641_vm6, %v1639_v23 }
 0x618   : > { %v1643_v24 = vld [vmem:[#allocation3] sm:$0xff] }
 0x619   : > { %2123 = vmatmul.mubr.msk.f32.vlgmr.msra.gmra.mrb[6].mxu0 %vm446_vm1, %v1643_v24 }
 0x6ec   : > { %v1717_v9 = vpop.f32.mrb[6].mxu0 }
 0x6ed   : > { %1721 = vst.msk [vmem:[%s440_s2] sm:$0xff] %vm446_vm1, %v1717_v9  ;;  %v2124_v32 = vpop.f32.mrb[7].mxu0 }
 0x6ee   : > { %2474 = shalt.err (!%p2471_p3)
}
 0x6ef   : > { %s2475_s16 = scalar_lea.hbm %s3596_s13, 128  ;;  %s2479_s25 = scalar_lea.hbm %s3952_s15, 256 }
 0x6f0   : > { %p2476_p7 = scmp.ne.s32.totalorder %s3596_s13, %s2475_s16  ;;  %p2480_p4 = scmp.lt.u32.totalorder %s3596_s13, %s3952_s15 }
 0x6f1   : > { %p2481_p13 = scmp.lt.u32.totalorder %s2479_s25, %s2475_s16  ;;  %p2483_p10 = scmp.lt.u32.totalorder %s2475_s16, %s3596_s13 }
 0x6f2   : > { %p2477_p9 = pnand %p2476_p7, %p3953_p11 }
 0x6f3   : > { %p2482_p0 = por %p2481_p13, %p2480_p4 }
 0x6f4   : > { %p2478_p6 = pneg %p2477_p9 }
 0x6f5   : > { %p2484_p12 = por %p2483_p10, %p2482_p0 }
 0x6f7   : > { %p2485_p1 = pnand %p2484_p12, %p2478_p6 }
 0x6f9   : > { %2488 = shalt.err (!%p2485_p1)
}
 0x6fa   : > { %2165 = dma.vmem_to_hbm [thread:$0]  (%p3953_p11), %s3598_s27, 128, %s3596_s13, %s1723_s23  }
 0x6fb PF: > { %s3954_s19 = sld [smem:[#allocation28_spill]]  ;;  %s3955_s0 = sld [smem:[#allocation36_spill]] }
 0x6fc   : > { %s3956_s30 = sld [smem:[#allocation31_spill]] }
 0x701   : > { %s1748_s18 = sand.u32 1, %s3954_s19   ;;  %p3957_p2 = scmp.ne.s32.totalorder %s3955_s0, 0 }
 0x702   : > { %p3958_p8 = scmp.ge.s32.totalorder %s3956_s30, 2  ;;  %s1749_s21 = scalar_lea.sflag [#allocation6], %s1748_s18 }
 0x704   : > { %p2194_p5 = pnand %p3958_p8, %p3957_p2 }
 0x706   : > { %2534 = dma.done.wait (!%p2194_p5), %s1749_s21, 128  }
 0x707   : > { %2536 = vsyncadd (!%p2194_p5), %s1749_s21, 4294967168  ;;  %s3959_s30 = sld [smem:[#allocation33_spill]]  ;;  %s3960_s27 = sld [smem:[#allocation29_spill]] }
 0x708   : > { %s3961_s28 = sld [smem:[#allocation30_spill]]  ;;  %s3962_s29 = sld [smem:[#allocation34_spill]] }
 0x70d   : > { %p28_p3 = scmp.ge.s32.totalorder %s3959_s30, 4  }
 0x70f   :  { %30 = sbr.rel (!%p28_p3) target bundleno = 21 (0x15), region = 138 }
 0x716   :  { %1754 = vsyncpa [#allocation5], 1 }
 0x717   :  { %1756 = vsyncpa [#allocation5 + $0x1], 1 }
 0x718   :  { %1757 = vsyncpa [#allocation9], 1 }
 0x719   :  { %1759 = vsyncpa [#allocation9 + $0x1], 1 }
 0x71a   :  { %1760 = vsyncpa [#allocation12], 1 }
 0x71b   :  { %1761 = vsyncpa [#allocation6], 1 }
 0x71c   :  { %1763 = vsyncpa [#allocation6 + $0x1], 1 }
 0x71d   :  { %1764 = vsyncpa [#allocation7], 1 }
 0x71e   :  { %1766 = vsyncpa [#allocation7 + $0x1], 1 }
 0x71f   :  { %1767 = vsyncpa [#allocation15], 1 }
 0x720   :  { %1768 = vsyncpa [#allocation18], 1 }

</bundles_post_ra>
